<compile_context>
chip_gen: v7x
topology: tpu7x:2x2x1
jax: 0.10.0
libtpu: 0.0.40
codegen_flags: <defaults>
</compile_context>

<pallas_src>
import jax
import jax.numpy as jnp
from jax import lax
from jax.experimental import pallas as pl
from jax.experimental.pallas import tpu as pltpu

EPS = 1e-5
NEG_SLOPE = 0.01
KH = KW = 3
LANE = 128

# Conservative across v5e/v6e (128 MiB physical VMEM) and v7x (64 MiB): the
# tile picker targets <= 32 MiB of estimated double-buffered footprint and the
# scoped limit is 48 MiB.  v6e-only deployments can raise both and grow TH.
VMEM_BUDGET = 32 * 1024 * 1024
VMEM_LIMIT = 48 * 1024 * 1024


def _round_up(x, m):
    return (x + m - 1) // m * m


def _estimate_step_vmem(th, w, cin_p, cout_p):
    """Rough per-grid-step VMEM footprint (double-buffered pipeline)."""
    wp = w + 2
    b = 0
    b += 2 * th * wp * cin_p * 2            # xa tile (bf16, 2 buffers)
    b += 2 * 2 * wp * cin_p * 2             # 2 halo rows (bf16, 2 buffers)
    b += 2 * th * wp * cout_p * 2           # output tile (bf16, 2 buffers)
    b += 2 * KH * KW * cin_p * cout_p * 2   # im2col weights (bf16, 2 buffers)
    b += th * w * cout_p * 4                # f32 accumulator scratch
    return b


def _pick_th(h, w, cin_p, cout_p, budget=VMEM_BUDGET):
    """Largest divisor of h whose per-step VMEM estimate fits `budget`.

    Prefers >= 2 H-tiles (more grid steps for DMA/compute overlap and the two
    v7x TensorCores) as long as the tile keeps >= 8 rows.
    """
    divisors = [d for d in range(h, 0, -1) if h % d == 0]
    fitting = [d for d in divisors
               if _estimate_step_vmem(d, w, cin_p, cout_p) <= budget]
    if not fitting:
        return 1
    multi = [d for d in fitting if h // d >= 2 and d >= min(8, h)]
    return multi[0] if multi else fitting[0]


def _conv_bn_lrelu_kernel(xa_ref, xt_ref, xb_ref, w_ref, scale_ref, shift_ref,
                          o_ref, acc_ref):
    # xa_ref : (1, TH, Wp, Cin_p) bf16  activation rows [j*TH, (j+1)*TH)
    # xt_ref : (1, 1,  Wp, Cin_p) bf16  row j*TH-1     (top halo; dummy when j==0)
    # xb_ref : (1, 1,  Wp, Cin_p) bf16  row (j+1)*TH   (bottom halo; dummy on last tile)
    # w_ref  : (9, Cin_p, Cout_p) bf16  taps ordered (kh, kw)
    # scale_ref, shift_ref : (1, Cout_p) f32  folded conv-bias + eval BatchNorm
    # o_ref  : (1, TH, Wp, Cout_p) bf16  output, with zero W-halo columns 0 and Wp-1
    # acc_ref: (TH*W, Cout_p) f32 VMEM accumulator
    _, TH, Wp, Cin = xa_ref.shape
    W = Wp - 2
    Cout = o_ref.shape[3]
    j = pl.program_id(1)

    xa = xa_ref[0]                                        # (TH, Wp, Cin_p)

    # 3x3 conv = 9 accumulating per-tap MXU matmuls (K = Cin_p each).
    # kw -> static column slice of the zero-W-padded input (shared by all kh);
    # kh -> row shift of where the product is accumulated.
    for kw in range(KW):
        xs = xa[:, kw:kw + W, :].reshape(TH * W, Cin)

        # kh = 1: activation row t feeds output row t (all TH rows).
        z = jnp.dot(xs, w_ref[1 * KW + kw], preferred_element_type=jnp.float32)
        if kw == 0:
            acc_ref[...] = z                              # first tap inits acc
        else:
            acc_ref[...] += z

        if TH > 1:
            # kh = 0: activation row t-1 feeds output row t (t = 1..TH-1).
            z = jnp.dot(xs, w_ref[0 * KW + kw],
                        preferred_element_type=jnp.float32)
            acc_ref[pl.ds(W, (TH - 1) * W), :] += z[:(TH - 1) * W]
            # kh = 2: activation row t+1 feeds output row t (t = 0..TH-2).
            z = jnp.dot(xs, w_ref[2 * KW + kw],
                        preferred_element_type=jnp.float32)
            acc_ref[pl.ds(0, (TH - 1) * W), :] += z[W:]

    # Top halo: kh=0 tap of output row 0 reads the row above this tile.
    # Skipped on the first H tile (zero padding row).
    @pl.when(j > 0)
    def _():
        xt = xt_ref[...].reshape(Wp, Cin)
        for kw in range(KW):
            acc_ref[pl.ds(0, W), :] += jnp.dot(
                xt[kw:kw + W, :], w_ref[0 * KW + kw],
                preferred_element_type=jnp.float32)

    # Bottom halo: kh=2 tap of output row TH-1 reads the row below this tile.
    # Skipped on the last H tile (zero padding row).
    @pl.when(j < pl.num_programs(1) - 1)
    def _():
        xb = xb_ref[...].reshape(Wp, Cin)
        for kw in range(KW):
            acc_ref[pl.ds((TH - 1) * W, W), :] += jnp.dot(
                xb[kw:kw + W, :], w_ref[2 * KW + kw],
                preferred_element_type=jnp.float32)

    # Dropout2d(p=0.5) is identity in eval mode.
    # Folded conv-bias + BatchNorm2d(eval), then LeakyReLU(0.01), in f32.
    y = acc_ref[...] * scale_ref[...] + shift_ref[...]
    y = jnp.where(y >= 0, y, NEG_SLOPE * y)
    y = y.reshape(TH, W, Cout).astype(o_ref.dtype)

    # Store data into columns [1, W+1); rewrite the zero W-halo columns so the
    # next layer can consume this buffer directly (no wrapper-side jnp.pad).
    o_ref[0, :, 1:1 + W, :] = y
    zcol = jnp.zeros((TH, 1, Cout), o_ref.dtype)
    o_ref[0, :, 0:1, :] = zcol
    o_ref[0, :, 1 + W:2 + W, :] = zcol


def _conv_block_nhwc(x_nhwc, weight, bias, gamma, beta, mean, var):
    """One ConvDropoutNormNonlin block (eval mode).

    x_nhwc: (N, H, W+2, Cin_p) bf16, zero columns at W index 0 and W+1, channels
    zero-padded to a multiple of 128.  Returns the same layout with Cout_p lanes.
    """
    N, H, Wp, Cin_p = x_nhwc.shape
    W = Wp - 2
    Cout, Cin, kh_, kw_ = weight.shape
    assert kh_ == KH and kw_ == KW and Cin <= Cin_p
    Cout_p = _round_up(Cout, LANE)

    TH = _pick_th(H, W, Cin_p, Cout_p)
    num_tiles = H // TH

    # Weights: (O, I, 3, 3) -> (3, 3, I, O) -> channel-pad -> (9, Cin_p, Cout_p) bf16.
    w = jnp.transpose(weight, (2, 3, 1, 0)).astype(jnp.float32)
    w = jnp.pad(w, ((0, 0), (0, 0), (0, Cin_p - Cin), (0, Cout_p - Cout)))
    w = w.reshape(KH * KW, Cin_p, Cout_p).astype(jnp.bfloat16)

    # Fold conv bias + eval BatchNorm into per-channel scale/shift (f32).
    # Padded lanes get scale = shift = 0 so padded output channels stay exact zero.
    scale = gamma.astype(jnp.float32) * lax.rsqrt(var.astype(jnp.float32) + EPS)
    shift = beta.astype(jnp.float32) + (bias.astype(jnp.float32)
                                        - mean.astype(jnp.float32)) * scale
    scale = jnp.pad(scale, (0, Cout_p - Cout)).reshape(1, Cout_p)
    shift = jnp.pad(shift, (0, Cout_p - Cout)).reshape(1, Cout_p)

    return pl.pallas_call(
        _conv_bn_lrelu_kernel,
        out_shape=jax.ShapeDtypeStruct((N, H, Wp, Cout_p), jnp.bfloat16),
        grid=(N, num_tiles),
        in_specs=[
            # Main TH-row tile.
            pl.BlockSpec((1, TH, Wp, Cin_p), lambda n, j: (n, j, 0, 0)),
            # 1-row top halo (clamped; contribution masked in-kernel when j == 0).
            pl.BlockSpec((1, 1, Wp, Cin_p),
                         lambda n, j: (n, jnp.maximum(j * TH - 1, 0), 0, 0)),
            # 1-row bottom halo (clamped; masked in-kernel on the last tile).
            pl.BlockSpec((1, 1, Wp, Cin_p),
                         lambda n, j: (n, jnp.minimum((j + 1) * TH, H - 1), 0, 0)),
            pl.BlockSpec((KH * KW, Cin_p, Cout_p), lambda n, j: (0, 0, 0)),
            pl.BlockSpec((1, Cout_p), lambda n, j: (0, 0)),   # scale
            pl.BlockSpec((1, Cout_p), lambda n, j: (0, 0)),   # shift
        ],
        out_specs=pl.BlockSpec((1, TH, Wp, Cout_p), lambda n, j: (n, j, 0, 0)),
        scratch_shapes=[pltpu.VMEM((TH * W, Cout_p), jnp.float32)],
        compiler_params=pltpu.CompilerParams(
            dimension_semantics=("parallel", "parallel"),
            vmem_limit_bytes=VMEM_LIMIT),
    )(x_nhwc, x_nhwc, x_nhwc, w, scale, shift)


def stacked_conv_layers(x_nchw, layers):
    """StackedConvLayers forward (eval mode). NCHW in / NCHW out.

    layers: sequence of dicts with keys weight (O,I,3,3), bias, gamma, beta,
    running_mean, running_var.
    """
    N, Cin, H, W = x_nchw.shape
    Cin_p = _round_up(Cin, LANE)

    # One NCHW -> NHWC transpose + W-halo/channel pad for the whole stack; the
    # per-layer kernels keep the activation in this padded bf16 layout.
    x = jnp.transpose(x_nchw, (0, 2, 3, 1))
    x = jnp.pad(x, ((0, 0), (0, 0), (1, 1), (0, Cin_p - Cin)))
    x = x.astype(jnp.bfloat16)

    for p in layers:
        x = _conv_block_nhwc(x, p["weight"], p["bias"], p["gamma"], p["beta"],
                             p["running_mean"], p["running_var"])

    Cout = layers[-1]["weight"].shape[0]
    out = x[:, :, 1:1 + W, :Cout]
    return jnp.transpose(out, (0, 3, 1, 2)).astype(jnp.float32)


def _reference(x_nchw, layers):
    """Pure-JAX f32 reference (conv + eval BN + leaky relu, stacked)."""
    y = x_nchw
    for p in layers:
        y = lax.conv_general_dilated(
            y, p["weight"], window_strides=(1, 1), padding=((1, 1), (1, 1)),
            dimension_numbers=("NCHW", "OIHW", "NCHW"))
        y = y + p["bias"][None, :, None, None]
        inv_std = lax.rsqrt(p["running_var"] + EPS)
        scale = (p["gamma"] * inv_std)[None, :, None, None]
        shift = (p["beta"] - p["running_mean"] * p["gamma"] * inv_std)[None, :, None, None]
        y = y * scale + shift
        y = jnp.where(y >= 0, y, NEG_SLOPE * y)
    return y


if __name__ == "__main__":
    key = jax.random.PRNGKey(0)
    N, Cin, Cout, H, W = 2, 4, 8, 16, 16
    num_convs = 2

    layers = []
    in_ch = Cin
    for _ in range(num_convs):
        key, kw_, kb, kg, kbe, km, kv = jax.random.split(key, 7)
        layers.append(dict(
            weight=jax.random.normal(kw_, (Cout, in_ch, KH, KW), jnp.float32) * 0.1,
            bias=jax.random.normal(kb, (Cout,), jnp.float32) * 0.1,
            gamma=1.0 + 0.1 * jax.random.normal(kg, (Cout,), jnp.float32),
            beta=0.1 * jax.random.normal(kbe, (Cout,), jnp.float32),
            running_mean=0.1 * jax.random.normal(km, (Cout,), jnp.float32),
            running_var=0.5 + 0.5 * jnp.abs(jax.random.normal(kv, (Cout,), jnp.float32)),
        ))
        in_ch = Cout

    key, kx = jax.random.split(key)
    x = jax.random.normal(kx, (N, Cin, H, W), jnp.float32)

    fwd = jax.jit(stacked_conv_layers)
    out = jax.block_until_ready(fwd(x, layers))
    ref = jax.block_until_ready(_reference(x, layers))

    assert out.shape == (N, Cout, H, W), out.shape
    max_err = float(jnp.max(jnp.abs(out - ref)))
    # bf16 MXU operands + bf16 inter-layer activations vs. f32 reference.
    assert max_err < 1e-1, f"max abs error too large: {max_err}"

    print("KERNEL_OK")
</pallas_src>

<mosaic_0001>
module attributes {stable_mosaic.version = 11 : i64} {
  func.func @_conv_bn_lrelu_kernel(%arg0: i32, %arg1: i32, %arg2: memref<1x8x18x128xbf16, #tpu.memory_space<vmem>>, %arg3: memref<1x1x18x128xbf16, #tpu.memory_space<vmem>>, %arg4: memref<1x1x18x128xbf16, #tpu.memory_space<vmem>>, %arg5: memref<9x128x128xbf16, #tpu.memory_space<vmem>>, %arg6: memref<1x128xf32, #tpu.memory_space<vmem>>, %arg7: memref<1x128xf32, #tpu.memory_space<vmem>>, %arg8: memref<1x8x18x128xbf16, #tpu.memory_space<vmem>>, %arg9: memref<128x128xf32, #tpu.memory_space<vmem>>) attributes {dimension_semantics = [#tpu.dimension_semantics<parallel>, #tpu.dimension_semantics<parallel>], iteration_bounds = array<i64: 2, 2>, scalar_prefetch = 0 : i64, scratch_operands = 1 : i64, tpu.core_type = #tpu.core_type<tc>, window_params = [{transform_indices = @transform_0, window_bounds = array<i64: 1, 8, 18, 128>}, {transform_indices = @transform_1, window_bounds = array<i64: 1, 1, 18, 128>}, {transform_indices = @transform_2, window_bounds = array<i64: 1, 1, 18, 128>}, {pipeline_mode = #tpu.pipeline_mode<synchronous>, transform_indices = @transform_3, window_bounds = array<i64: 9, 128, 128>}, {pipeline_mode = #tpu.pipeline_mode<synchronous>, transform_indices = @transform_4, window_bounds = array<i64: 1, 128>}, {pipeline_mode = #tpu.pipeline_mode<synchronous>, transform_indices = @transform_5, window_bounds = array<i64: 1, 128>}, {transform_indices = @transform_6, window_bounds = array<i64: 1, 8, 18, 128>}]} {
    %c0 = arith.constant 0 : index
    %c0_0 = arith.constant 0 : index
    %c0_1 = arith.constant 0 : index
    %c0_2 = arith.constant 0 : index
    %0 = vector.load %arg2[%c0, %c0_0, %c0_1, %c0_2] : memref<1x8x18x128xbf16, #tpu.memory_space<vmem>>, vector<1x8x18x128xbf16>
    %1 = vector.shape_cast %0 : vector<1x8x18x128xbf16> to vector<8x18x128xbf16>
    %2 = vector.extract_strided_slice %1 {offsets = [0, 0, 0], sizes = [8, 16, 128], strides = [1, 1, 1]} : vector<8x18x128xbf16> to vector<8x16x128xbf16>
    %3 = vector.shape_cast %2 : vector<8x16x128xbf16> to vector<128x128xbf16>
    %c3 = arith.constant 3 : index
    %c0_3 = arith.constant 0 : index
    %c0_4 = arith.constant 0 : index
    %4 = vector.load %arg5[%c3, %c0_3, %c0_4] : memref<9x128x128xbf16, #tpu.memory_space<vmem>>, vector<1x128x128xbf16>
    %5 = vector.shape_cast %4 : vector<1x128x128xbf16> to vector<128x128xbf16>
    %cst = arith.constant dense<0.000000e+00> : vector<128x128xf32>
    %6 = tpu.matmul %3, %5, %cst {dimension_numbers = #tpu.dot_dimension_numbers<[1], [0], [0], [1], [0, 0, 1, 1], [], []>} : vector<128x128xbf16>, vector<128x128xbf16>, vector<128x128xf32> -> vector<128x128xf32>
    %c0_5 = arith.constant 0 : index
    %c0_6 = arith.constant 0 : index
    %7 = vector.load %arg9[%c0_5, %c0_6] : memref<128x128xf32, #tpu.memory_space<vmem>>, vector<128x128xf32>
    tpu.vector_store %arg9[%c0_5, %c0_6], %6 {strides = array<i32>} : memref<128x128xf32, #tpu.memory_space<vmem>>, vector<128x128xf32>,
    %c0_7 = arith.constant 0 : index
    %c0_8 = arith.constant 0 : index
    %c0_9 = arith.constant 0 : index
    %8 = vector.load %arg5[%c0_7, %c0_8, %c0_9] : memref<9x128x128xbf16, #tpu.memory_space<vmem>>, vector<1x128x128xbf16>
    %9 = vector.shape_cast %8 : vector<1x128x128xbf16> to vector<128x128xbf16>
    %cst_10 = arith.constant dense<0.000000e+00> : vector<128x128xf32>
    %10 = tpu.matmul %3, %9, %cst_10 {dimension_numbers = #tpu.dot_dimension_numbers<[1], [0], [0], [1], [0, 0, 1, 1], [], []>} : vector<128x128xbf16>, vector<128x128xbf16>, vector<128x128xf32> -> vector<128x128xf32>
    %c16 = arith.constant 16 : index
    %c0_11 = arith.constant 0 : index
    %11 = vector.load %arg9[%c16, %c0_11] : memref<128x128xf32, #tpu.memory_space<vmem>>, vector<112x128xf32>
    %12 = vector.extract_strided_slice %10 {offsets = [0, 0], sizes = [112, 128], strides = [1, 1]} : vector<128x128xf32> to vector<112x128xf32>
    %13 = arith.addf %11, %12 : vector<112x128xf32>
    %c16_12 = arith.constant 16 : index
    %c0_13 = arith.constant 0 : index
    %14 = vector.load %arg9[%c16_12, %c0_13] : memref<128x128xf32, #tpu.memory_space<vmem>>, vector<112x128xf32>
    tpu.vector_store %arg9[%c16_12, %c0_13], %13 {strides = array<i32>} : memref<128x128xf32, #tpu.memory_space<vmem>>, vector<112x128xf32>,
    %c6 = arith.constant 6 : index
    %c0_14 = arith.constant 0 : index
    %c0_15 = arith.constant 0 : index
    %15 = vector.load %arg5[%c6, %c0_14, %c0_15] : memref<9x128x128xbf16, #tpu.memory_space<vmem>>, vector<1x128x128xbf16>
    %16 = vector.shape_cast %15 : vector<1x128x128xbf16> to vector<128x128xbf16>
    %cst_16 = arith.constant dense<0.000000e+00> : vector<128x128xf32>
    %17 = tpu.matmul %3, %16, %cst_16 {dimension_numbers = #tpu.dot_dimension_numbers<[1], [0], [0], [1], [0, 0, 1, 1], [], []>} : vector<128x128xbf16>, vector<128x128xbf16>, vector<128x128xf32> -> vector<128x128xf32>
    %c0_17 = arith.constant 0 : index
    %c0_18 = arith.constant 0 : index
    %18 = vector.load %arg9[%c0_17, %c0_18] : memref<128x128xf32, #tpu.memory_space<vmem>>, vector<112x128xf32>
    %19 = vector.extract_strided_slice %17 {offsets = [16, 0], sizes = [112, 128], strides = [1, 1]} : vector<128x128xf32> to vector<112x128xf32>
    %20 = arith.addf %18, %19 : vector<112x128xf32>
    %c0_19 = arith.constant 0 : index
    %c0_20 = arith.constant 0 : index
    %21 = vector.load %arg9[%c0_19, %c0_20] : memref<128x128xf32, #tpu.memory_space<vmem>>, vector<112x128xf32>
    tpu.vector_store %arg9[%c0_19, %c0_20], %20 {strides = array<i32>} : memref<128x128xf32, #tpu.memory_space<vmem>>, vector<112x128xf32>,
    %22 = vector.extract_strided_slice %1 {offsets = [0, 1, 0], sizes = [8, 16, 128], strides = [1, 1, 1]} : vector<8x18x128xbf16> to vector<8x16x128xbf16>
    %23 = vector.shape_cast %22 : vector<8x16x128xbf16> to vector<128x128xbf16>
    %c4 = arith.constant 4 : index
    %c0_21 = arith.constant 0 : index
    %c0_22 = arith.constant 0 : index
    %24 = vector.load %arg5[%c4, %c0_21, %c0_22] : memref<9x128x128xbf16, #tpu.memory_space<vmem>>, vector<1x128x128xbf16>
    %25 = vector.shape_cast %24 : vector<1x128x128xbf16> to vector<128x128xbf16>
    %cst_23 = arith.constant dense<0.000000e+00> : vector<128x128xf32>
    %26 = tpu.matmul %23, %25, %cst_23 {dimension_numbers = #tpu.dot_dimension_numbers<[1], [0], [0], [1], [0, 0, 1, 1], [], []>} : vector<128x128xbf16>, vector<128x128xbf16>, vector<128x128xf32> -> vector<128x128xf32>
    %c0_24 = arith.constant 0 : index
    %c0_25 = arith.constant 0 : index
    %27 = vector.load %arg9[%c0_24, %c0_25] : memref<128x128xf32, #tpu.memory_space<vmem>>, vector<128x128xf32>
    %28 = arith.addf %27, %26 : vector<128x128xf32>
    %c0_26 = arith.constant 0 : index
    %c0_27 = arith.constant 0 : index
    %29 = vector.load %arg9[%c0_26, %c0_27] : memref<128x128xf32, #tpu.memory_space<vmem>>, vector<128x128xf32>
    tpu.vector_store %arg9[%c0_26, %c0_27], %28 {strides = array<i32>} : memref<128x128xf32, #tpu.memory_space<vmem>>, vector<128x128xf32>,
    %c1 = arith.constant 1 : index
    %c0_28 = arith.constant 0 : index
    %c0_29 = arith.constant 0 : index
    %30 = vector.load %arg5[%c1, %c0_28, %c0_29] : memref<9x128x128xbf16, #tpu.memory_space<vmem>>, vector<1x128x128xbf16>
    %31 = vector.shape_cast %30 : vector<1x128x128xbf16> to vector<128x128xbf16>
    %cst_30 = arith.constant dense<0.000000e+00> : vector<128x128xf32>
    %32 = tpu.matmul %23, %31, %cst_30 {dimension_numbers = #tpu.dot_dimension_numbers<[1], [0], [0], [1], [0, 0, 1, 1], [], []>} : vector<128x128xbf16>, vector<128x128xbf16>, vector<128x128xf32> -> vector<128x128xf32>
    %c16_31 = arith.constant 16 : index
    %c0_32 = arith.constant 0 : index
    %33 = vector.load %arg9[%c16_31, %c0_32] : memref<128x128xf32, #tpu.memory_space<vmem>>, vector<112x128xf32>
    %34 = vector.extract_strided_slice %32 {offsets = [0, 0], sizes = [112, 128], strides = [1, 1]} : vector<128x128xf32> to vector<112x128xf32>
    %35 = arith.addf %33, %34 : vector<112x128xf32>
    %c16_33 = arith.constant 16 : index
    %c0_34 = arith.constant 0 : index
    %36 = vector.load %arg9[%c16_33, %c0_34] : memref<128x128xf32, #tpu.memory_space<vmem>>, vector<112x128xf32>
    tpu.vector_store %arg9[%c16_33, %c0_34], %35 {strides = array<i32>} : memref<128x128xf32, #tpu.memory_space<vmem>>, vector<112x128xf32>,
    %c7 = arith.constant 7 : index
    %c0_35 = arith.constant 0 : index
    %c0_36 = arith.constant 0 : index
    %37 = vector.load %arg5[%c7, %c0_35, %c0_36] : memref<9x128x128xbf16, #tpu.memory_space<vmem>>, vector<1x128x128xbf16>
    %38 = vector.shape_cast %37 : vector<1x128x128xbf16> to vector<128x128xbf16>
    %cst_37 = arith.constant dense<0.000000e+00> : vector<128x128xf32>
    %39 = tpu.matmul %23, %38, %cst_37 {dimension_numbers = #tpu.dot_dimension_numbers<[1], [0], [0], [1], [0, 0, 1, 1], [], []>} : vector<128x128xbf16>, vector<128x128xbf16>, vector<128x128xf32> -> vector<128x128xf32>
    %c0_38 = arith.constant 0 : index
    %c0_39 = arith.constant 0 : index
    %40 = vector.load %arg9[%c0_38, %c0_39] : memref<128x128xf32, #tpu.memory_space<vmem>>, vector<112x128xf32>
    %41 = vector.extract_strided_slice %39 {offsets = [16, 0], sizes = [112, 128], strides = [1, 1]} : vector<128x128xf32> to vector<112x128xf32>
    %42 = arith.addf %40, %41 : vector<112x128xf32>
    %c0_40 = arith.constant 0 : index
    %c0_41 = arith.constant 0 : index
    %43 = vector.load %arg9[%c0_40, %c0_41] : memref<128x128xf32, #tpu.memory_space<vmem>>, vector<112x128xf32>
    tpu.vector_store %arg9[%c0_40, %c0_41], %42 {strides = array<i32>} : memref<128x128xf32, #tpu.memory_space<vmem>>, vector<112x128xf32>,
    %44 = vector.extract_strided_slice %1 {offsets = [0, 2, 0], sizes = [8, 16, 128], strides = [1, 1, 1]} : vector<8x18x128xbf16> to vector<8x16x128xbf16>
    %45 = vector.shape_cast %44 : vector<8x16x128xbf16> to vector<128x128xbf16>
    %c5 = arith.constant 5 : index
    %c0_42 = arith.constant 0 : index
    %c0_43 = arith.constant 0 : index
    %46 = vector.load %arg5[%c5, %c0_42, %c0_43] : memref<9x128x128xbf16, #tpu.memory_space<vmem>>, vector<1x128x128xbf16>
    %47 = vector.shape_cast %46 : vector<1x128x128xbf16> to vector<128x128xbf16>
    %cst_44 = arith.constant dense<0.000000e+00> : vector<128x128xf32>
    %48 = tpu.matmul %45, %47, %cst_44 {dimension_numbers = #tpu.dot_dimension_numbers<[1], [0], [0], [1], [0, 0, 1, 1], [], []>} : vector<128x128xbf16>, vector<128x128xbf16>, vector<128x128xf32> -> vector<128x128xf32>
    %c0_45 = arith.constant 0 : index
    %c0_46 = arith.constant 0 : index
    %49 = vector.load %arg9[%c0_45, %c0_46] : memref<128x128xf32, #tpu.memory_space<vmem>>, vector<128x128xf32>
    %50 = arith.addf %49, %48 : vector<128x128xf32>
    %c0_47 = arith.constant 0 : index
    %c0_48 = arith.constant 0 : index
    %51 = vector.load %arg9[%c0_47, %c0_48] : memref<128x128xf32, #tpu.memory_space<vmem>>, vector<128x128xf32>
    tpu.vector_store %arg9[%c0_47, %c0_48], %50 {strides = array<i32>} : memref<128x128xf32, #tpu.memory_space<vmem>>, vector<128x128xf32>,
    %c2 = arith.constant 2 : index
    %c0_49 = arith.constant 0 : index
    %c0_50 = arith.constant 0 : index
    %52 = vector.load %arg5[%c2, %c0_49, %c0_50] : memref<9x128x128xbf16, #tpu.memory_space<vmem>>, vector<1x128x128xbf16>
    %53 = vector.shape_cast %52 : vector<1x128x128xbf16> to vector<128x128xbf16>
    %cst_51 = arith.constant dense<0.000000e+00> : vector<128x128xf32>
    %54 = tpu.matmul %45, %53, %cst_51 {dimension_numbers = #tpu.dot_dimension_numbers<[1], [0], [0], [1], [0, 0, 1, 1], [], []>} : vector<128x128xbf16>, vector<128x128xbf16>, vector<128x128xf32> -> vector<128x128xf32>
    %c16_52 = arith.constant 16 : index
    %c0_53 = arith.constant 0 : index
    %55 = vector.load %arg9[%c16_52, %c0_53] : memref<128x128xf32, #tpu.memory_space<vmem>>, vector<112x128xf32>
    %56 = vector.extract_strided_slice %54 {offsets = [0, 0], sizes = [112, 128], strides = [1, 1]} : vector<128x128xf32> to vector<112x128xf32>
    %57 = arith.addf %55, %56 : vector<112x128xf32>
    %c16_54 = arith.constant 16 : index
    %c0_55 = arith.constant 0 : index
    %58 = vector.load %arg9[%c16_54, %c0_55] : memref<128x128xf32, #tpu.memory_space<vmem>>, vector<112x128xf32>
    tpu.vector_store %arg9[%c16_54, %c0_55], %57 {strides = array<i32>} : memref<128x128xf32, #tpu.memory_space<vmem>>, vector<112x128xf32>,
    %c8 = arith.constant 8 : index
    %c0_56 = arith.constant 0 : index
    %c0_57 = arith.constant 0 : index
    %59 = vector.load %arg5[%c8, %c0_56, %c0_57] : memref<9x128x128xbf16, #tpu.memory_space<vmem>>, vector<1x128x128xbf16>
    %60 = vector.shape_cast %59 : vector<1x128x128xbf16> to vector<128x128xbf16>
    %cst_58 = arith.constant dense<0.000000e+00> : vector<128x128xf32>
    %61 = tpu.matmul %45, %60, %cst_58 {dimension_numbers = #tpu.dot_dimension_numbers<[1], [0], [0], [1], [0, 0, 1, 1], [], []>} : vector<128x128xbf16>, vector<128x128xbf16>, vector<128x128xf32> -> vector<128x128xf32>
    %c0_59 = arith.constant 0 : index
    %c0_60 = arith.constant 0 : index
    %62 = vector.load %arg9[%c0_59, %c0_60] : memref<128x128xf32, #tpu.memory_space<vmem>>, vector<112x128xf32>
    %63 = vector.extract_strided_slice %61 {offsets = [16, 0], sizes = [112, 128], strides = [1, 1]} : vector<128x128xf32> to vector<112x128xf32>
    %64 = arith.addf %62, %63 : vector<112x128xf32>
    %c0_61 = arith.constant 0 : index
    %c0_62 = arith.constant 0 : index
    %65 = vector.load %arg9[%c0_61, %c0_62] : memref<128x128xf32, #tpu.memory_space<vmem>>, vector<112x128xf32>
    tpu.vector_store %arg9[%c0_61, %c0_62], %64 {strides = array<i32>} : memref<128x128xf32, #tpu.memory_space<vmem>>, vector<112x128xf32>,
    %c0_i32 = arith.constant 0 : i32
    %66 = arith.cmpi sgt, %arg1, %c0_i32 : i32
    %67 = arith.extui %66 : i1 to i32
    %c0_i32_63 = arith.constant 0 : i32
    %68 = arith.cmpi ne, %67, %c0_i32_63 : i32
    scf.if %68 {
      %c0_85 = arith.constant 0 : index
      %c0_86 = arith.constant 0 : index
      %c0_87 = arith.constant 0 : index
      %c0_88 = arith.constant 0 : index
      %96 = vector.load %arg3[%c0_85, %c0_86, %c0_87, %c0_88] : memref<1x1x18x128xbf16, #tpu.memory_space<vmem>>, vector<1x1x18x128xbf16>
      %97 = vector.shape_cast %96 : vector<1x1x18x128xbf16> to vector<18x128xbf16>
      %c0_89 = arith.constant 0 : index
      %c0_90 = arith.constant 0 : index
      %98 = vector.load %arg9[%c0_89, %c0_90] : memref<128x128xf32, #tpu.memory_space<vmem>>, vector<16x128xf32>
      %99 = vector.extract_strided_slice %97 {offsets = [0, 0], sizes = [16, 128], strides = [1, 1]} : vector<18x128xbf16> to vector<16x128xbf16>
      %c0_91 = arith.constant 0 : index
      %c0_92 = arith.constant 0 : index
      %c0_93 = arith.constant 0 : index
      %100 = vector.load %arg5[%c0_91, %c0_92, %c0_93] : memref<9x128x128xbf16, #tpu.memory_space<vmem>>, vector<1x128x128xbf16>
      %101 = vector.shape_cast %100 : vector<1x128x128xbf16> to vector<128x128xbf16>
      %cst_94 = arith.constant dense<0.000000e+00> : vector<16x128xf32>
      %102 = tpu.matmul %99, %101, %cst_94 {dimension_numbers = #tpu.dot_dimension_numbers<[1], [0], [0], [1], [0, 0, 1, 1], [], []>} : vector<16x128xbf16>, vector<128x128xbf16>, vector<16x128xf32> -> vector<16x128xf32>
      %103 = arith.addf %98, %102 : vector<16x128xf32>
      %c0_95 = arith.constant 0 : index
      %c0_96 = arith.constant 0 : index
      %104 = vector.load %arg9[%c0_95, %c0_96] : memref<128x128xf32, #tpu.memory_space<vmem>>, vector<16x128xf32>
      tpu.vector_store %arg9[%c0_95, %c0_96], %103 {strides = array<i32>} : memref<128x128xf32, #tpu.memory_space<vmem>>, vector<16x128xf32>,
      %c0_97 = arith.constant 0 : index
      %c0_98 = arith.constant 0 : index
      %105 = vector.load %arg9[%c0_97, %c0_98] : memref<128x128xf32, #tpu.memory_space<vmem>>, vector<16x128xf32>
      %106 = vector.extract_strided_slice %97 {offsets = [1, 0], sizes = [16, 128], strides = [1, 1]} : vector<18x128xbf16> to vector<16x128xbf16>
      %c1_99 = arith.constant 1 : index
      %c0_100 = arith.constant 0 : index
      %c0_101 = arith.constant 0 : index
      %107 = vector.load %arg5[%c1_99, %c0_100, %c0_101] : memref<9x128x128xbf16, #tpu.memory_space<vmem>>, vector<1x128x128xbf16>
      %108 = vector.shape_cast %107 : vector<1x128x128xbf16> to vector<128x128xbf16>
      %cst_102 = arith.constant dense<0.000000e+00> : vector<16x128xf32>
      %109 = tpu.matmul %106, %108, %cst_102 {dimension_numbers = #tpu.dot_dimension_numbers<[1], [0], [0], [1], [0, 0, 1, 1], [], []>} : vector<16x128xbf16>, vector<128x128xbf16>, vector<16x128xf32> -> vector<16x128xf32>
      %110 = arith.addf %105, %109 : vector<16x128xf32>
      %c0_103 = arith.constant 0 : index
      %c0_104 = arith.constant 0 : index
      %111 = vector.load %arg9[%c0_103, %c0_104] : memref<128x128xf32, #tpu.memory_space<vmem>>, vector<16x128xf32>
      tpu.vector_store %arg9[%c0_103, %c0_104], %110 {strides = array<i32>} : memref<128x128xf32, #tpu.memory_space<vmem>>, vector<16x128xf32>,
      %c0_105 = arith.constant 0 : index
      %c0_106 = arith.constant 0 : index
      %112 = vector.load %arg9[%c0_105, %c0_106] : memref<128x128xf32, #tpu.memory_space<vmem>>, vector<16x128xf32>
      %113 = vector.extract_strided_slice %97 {offsets = [2, 0], sizes = [16, 128], strides = [1, 1]} : vector<18x128xbf16> to vector<16x128xbf16>
      %c2_107 = arith.constant 2 : index
      %c0_108 = arith.constant 0 : index
      %c0_109 = arith.constant 0 : index
      %114 = vector.load %arg5[%c2_107, %c0_108, %c0_109] : memref<9x128x128xbf16, #tpu.memory_space<vmem>>, vector<1x128x128xbf16>
      %115 = vector.shape_cast %114 : vector<1x128x128xbf16> to vector<128x128xbf16>
      %cst_110 = arith.constant dense<0.000000e+00> : vector<16x128xf32>
      %116 = tpu.matmul %113, %115, %cst_110 {dimension_numbers = #tpu.dot_dimension_numbers<[1], [0], [0], [1], [0, 0, 1, 1], [], []>} : vector<16x128xbf16>, vector<128x128xbf16>, vector<16x128xf32> -> vector<16x128xf32>
      %117 = arith.addf %112, %116 : vector<16x128xf32>
      %c0_111 = arith.constant 0 : index
      %c0_112 = arith.constant 0 : index
      %118 = vector.load %arg9[%c0_111, %c0_112] : memref<128x128xf32, #tpu.memory_space<vmem>>, vector<16x128xf32>
      tpu.vector_store %arg9[%c0_111, %c0_112], %117 {strides = array<i32>} : memref<128x128xf32, #tpu.memory_space<vmem>>, vector<16x128xf32>,
    } else {
    }
    %c1_i32 = arith.constant 1 : i32
    %69 = arith.cmpi slt, %arg1, %c1_i32 : i32
    %70 = arith.extui %69 : i1 to i32
    %c0_i32_64 = arith.constant 0 : i32
    %71 = arith.cmpi ne, %70, %c0_i32_64 : i32
    scf.if %71 {
      %c0_85 = arith.constant 0 : index
      %c0_86 = arith.constant 0 : index
      %c0_87 = arith.constant 0 : index
      %c0_88 = arith.constant 0 : index
      %96 = vector.load %arg4[%c0_85, %c0_86, %c0_87, %c0_88] : memref<1x1x18x128xbf16, #tpu.memory_space<vmem>>, vector<1x1x18x128xbf16>
      %97 = vector.shape_cast %96 : vector<1x1x18x128xbf16> to vector<18x128xbf16>
      %c112 = arith.constant 112 : index
      %c0_89 = arith.constant 0 : index
      %98 = vector.load %arg9[%c112, %c0_89] : memref<128x128xf32, #tpu.memory_space<vmem>>, vector<16x128xf32>
      %99 = vector.extract_strided_slice %97 {offsets = [0, 0], sizes = [16, 128], strides = [1, 1]} : vector<18x128xbf16> to vector<16x128xbf16>
      %c6_90 = arith.constant 6 : index
      %c0_91 = arith.constant 0 : index
      %c0_92 = arith.constant 0 : index
      %100 = vector.load %arg5[%c6_90, %c0_91, %c0_92] : memref<9x128x128xbf16, #tpu.memory_space<vmem>>, vector<1x128x128xbf16>
      %101 = vector.shape_cast %100 : vector<1x128x128xbf16> to vector<128x128xbf16>
      %cst_93 = arith.constant dense<0.000000e+00> : vector<16x128xf32>
      %102 = tpu.matmul %99, %101, %cst_93 {dimension_numbers = #tpu.dot_dimension_numbers<[1], [0], [0], [1], [0, 0, 1, 1], [], []>} : vector<16x128xbf16>, vector<128x128xbf16>, vector<16x128xf32> -> vector<16x128xf32>
      %103 = arith.addf %98, %102 : vector<16x128xf32>
      %c112_94 = arith.constant 112 : index
      %c0_95 = arith.constant 0 : index
      %104 = vector.load %arg9[%c112_94, %c0_95] : memref<128x128xf32, #tpu.memory_space<vmem>>, vector<16x128xf32>
      tpu.vector_store %arg9[%c112_94, %c0_95], %103 {strides = array<i32>} : memref<128x128xf32, #tpu.memory_space<vmem>>, vector<16x128xf32>,
      %c112_96 = arith.constant 112 : index
      %c0_97 = arith.constant 0 : index
      %105 = vector.load %arg9[%c112_96, %c0_97] : memref<128x128xf32, #tpu.memory_space<vmem>>, vector<16x128xf32>
      %106 = vector.extract_strided_slice %97 {offsets = [1, 0], sizes = [16, 128], strides = [1, 1]} : vector<18x128xbf16> to vector<16x128xbf16>
      %c7_98 = arith.constant 7 : index
      %c0_99 = arith.constant 0 : index
      %c0_100 = arith.constant 0 : index
      %107 = vector.load %arg5[%c7_98, %c0_99, %c0_100] : memref<9x128x128xbf16, #tpu.memory_space<vmem>>, vector<1x128x128xbf16>
      %108 = vector.shape_cast %107 : vector<1x128x128xbf16> to vector<128x128xbf16>
      %cst_101 = arith.constant dense<0.000000e+00> : vector<16x128xf32>
      %109 = tpu.matmul %106, %108, %cst_101 {dimension_numbers = #tpu.dot_dimension_numbers<[1], [0], [0], [1], [0, 0, 1, 1], [], []>} : vector<16x128xbf16>, vector<128x128xbf16>, vector<16x128xf32> -> vector<16x128xf32>
      %110 = arith.addf %105, %109 : vector<16x128xf32>
      %c112_102 = arith.constant 112 : index
      %c0_103 = arith.constant 0 : index
      %111 = vector.load %arg9[%c112_102, %c0_103] : memref<128x128xf32, #tpu.memory_space<vmem>>, vector<16x128xf32>
      tpu.vector_store %arg9[%c112_102, %c0_103], %110 {strides = array<i32>} : memref<128x128xf32, #tpu.memory_space<vmem>>, vector<16x128xf32>,
      %c112_104 = arith.constant 112 : index
      %c0_105 = arith.constant 0 : index
      %112 = vector.load %arg9[%c112_104, %c0_105] : memref<128x128xf32, #tpu.memory_space<vmem>>, vector<16x128xf32>
      %113 = vector.extract_strided_slice %97 {offsets = [2, 0], sizes = [16, 128], strides = [1, 1]} : vector<18x128xbf16> to vector<16x128xbf16>
      %c8_106 = arith.constant 8 : index
      %c0_107 = arith.constant 0 : index
      %c0_108 = arith.constant 0 : index
      %114 = vector.load %arg5[%c8_106, %c0_107, %c0_108] : memref<9x128x128xbf16, #tpu.memory_space<vmem>>, vector<1x128x128xbf16>
      %115 = vector.shape_cast %114 : vector<1x128x128xbf16> to vector<128x128xbf16>
      %cst_109 = arith.constant dense<0.000000e+00> : vector<16x128xf32>
      %116 = tpu.matmul %113, %115, %cst_109 {dimension_numbers = #tpu.dot_dimension_numbers<[1], [0], [0], [1], [0, 0, 1, 1], [], []>} : vector<16x128xbf16>, vector<128x128xbf16>, vector<16x128xf32> -> vector<16x128xf32>
      %117 = arith.addf %112, %116 : vector<16x128xf32>
      %c112_110 = arith.constant 112 : index
      %c0_111 = arith.constant 0 : index
      %118 = vector.load %arg9[%c112_110, %c0_111] : memref<128x128xf32, #tpu.memory_space<vmem>>, vector<16x128xf32>
      tpu.vector_store %arg9[%c112_110, %c0_111], %117 {strides = array<i32>} : memref<128x128xf32, #tpu.memory_space<vmem>>, vector<16x128xf32>,
    } else {
    }
    %c0_65 = arith.constant 0 : index
    %c0_66 = arith.constant 0 : index
    %72 = vector.load %arg9[%c0_65, %c0_66] : memref<128x128xf32, #tpu.memory_space<vmem>>, vector<128x128xf32>
    %c0_67 = arith.constant 0 : index
    %c0_68 = arith.constant 0 : index
    %73 = vector.load %arg6[%c0_67, %c0_68] : memref<1x128xf32, #tpu.memory_space<vmem>>, vector<1x128xf32>
    %74 = vector.broadcast %73 : vector<1x128xf32> to vector<128x128xf32>
    %75 = arith.mulf %72, %74 : vector<128x128xf32>
    %c0_69 = arith.constant 0 : index
    %c0_70 = arith.constant 0 : index
    %76 = vector.load %arg7[%c0_69, %c0_70] : memref<1x128xf32, #tpu.memory_space<vmem>>, vector<1x128xf32>
    %77 = vector.broadcast %76 : vector<1x128xf32> to vector<128x128xf32>
    %78 = arith.addf %75, %77 : vector<128x128xf32>
    %cst_71 = arith.constant 0.000000e+00 : f32
    %79 = vector.broadcast %cst_71 : f32 to vector<128x128xf32>
    %80 = arith.cmpf oge, %78, %79 : vector<128x128xf32>
    %cst_72 = arith.constant 0.00999999977 : f32
    %81 = vector.broadcast %cst_72 : f32 to vector<128x128xf32>
    %82 = arith.mulf %81, %78 : vector<128x128xf32>
    %83 = arith.select %80, %78, %82 : vector<128x128xi1>, vector<128x128xf32>
    %84 = vector.shape_cast %83 : vector<128x128xf32> to vector<8x16x128xf32>
    %85 = arith.truncf %84 : vector<8x16x128xf32> to vector<8x16x128xbf16>
    %c0_73 = arith.constant 0 : index
    %c0_74 = arith.constant 0 : index
    %c1_75 = arith.constant 1 : index
    %c0_76 = arith.constant 0 : index
    %86 = vector.load %arg8[%c0_73, %c0_74, %c1_75, %c0_76] : memref<1x8x18x128xbf16, #tpu.memory_space<vmem>>, vector<1x8x16x128xbf16>
    %87 = vector.shape_cast %86 : vector<1x8x16x128xbf16> to vector<8x16x128xbf16>
    %88 = vector.shape_cast %85 : vector<8x16x128xbf16> to vector<1x8x16x128xbf16>
    tpu.vector_store %arg8[%c0_73, %c0_74, %c1_75, %c0_76], %88 {strides = array<i32>} : memref<1x8x18x128xbf16, #tpu.memory_space<vmem>>, vector<1x8x16x128xbf16>,
    %cst_77 = arith.constant 0.000000e+00 : bf16
    %89 = vector.broadcast %cst_77 : bf16 to vector<8x1x128xbf16>
    %c0_78 = arith.constant 0 : index
    %c0_79 = arith.constant 0 : index
    %c0_80 = arith.constant 0 : index
    %c0_81 = arith.constant 0 : index
    %90 = vector.load %arg8[%c0_78, %c0_79, %c0_80, %c0_81] : memref<1x8x18x128xbf16, #tpu.memory_space<vmem>>, vector<1x8x1x128xbf16>
    %91 = vector.shape_cast %90 : vector<1x8x1x128xbf16> to vector<8x1x128xbf16>
    %92 = vector.shape_cast %89 : vector<8x1x128xbf16> to vector<1x8x1x128xbf16>
    tpu.vector_store %arg8[%c0_78, %c0_79, %c0_80, %c0_81], %92 {strides = array<i32>} : memref<1x8x18x128xbf16, #tpu.memory_space<vmem>>, vector<1x8x1x128xbf16>,
    %c0_82 = arith.constant 0 : index
    %c0_83 = arith.constant 0 : index
    %c17 = arith.constant 17 : index
    %c0_84 = arith.constant 0 : index
    %93 = vector.load %arg8[%c0_82, %c0_83, %c17, %c0_84] : memref<1x8x18x128xbf16, #tpu.memory_space<vmem>>, vector<1x8x1x128xbf16>
    %94 = vector.shape_cast %93 : vector<1x8x1x128xbf16> to vector<8x1x128xbf16>
    %95 = vector.shape_cast %89 : vector<8x1x128xbf16> to vector<1x8x1x128xbf16>
    tpu.vector_store %arg8[%c0_82, %c0_83, %c17, %c0_84], %95 {strides = array<i32>} : memref<1x8x18x128xbf16, #tpu.memory_space<vmem>>, vector<1x8x1x128xbf16>,
    return
  }
  func.func @transform_0(%arg0: i32, %arg1: i32) -> (i32, i32, i32, i32) {
    %c0_i32 = arith.constant 0 : i32
    %c0_i32_0 = arith.constant 0 : i32
    %c0_i32_1 = arith.constant 0 : i32
    return %arg0, %arg1, %c0_i32, %c0_i32_0 : i32, i32, i32, i32
  }
  func.func @transform_1(%arg0: i32, %arg1: i32) -> (i32, i32, i32, i32) {
    %c8_i32 = arith.constant 8 : i32
    %0 = arith.muli %arg1, %c8_i32 : i32
    %c1_i32 = arith.constant 1 : i32
    %1 = arith.subi %0, %c1_i32 : i32
    %c0_i32 = arith.constant 0 : i32
    %2 = arith.maxsi %1, %c0_i32 : i32
    %c0_i32_0 = arith.constant 0 : i32
    %c0_i32_1 = arith.constant 0 : i32
    %c0_i32_2 = arith.constant 0 : i32
    return %arg0, %2, %c0_i32_0, %c0_i32_1 : i32, i32, i32, i32
  }
  func.func @transform_2(%arg0: i32, %arg1: i32) -> (i32, i32, i32, i32) {
    %c1_i32 = arith.constant 1 : i32
    %0 = arith.addi %arg1, %c1_i32 : i32
    %c8_i32 = arith.constant 8 : i32
    %1 = arith.muli %0, %c8_i32 : i32
    %c15_i32 = arith.constant 15 : i32
    %2 = arith.minsi %1, %c15_i32 : i32
    %c0_i32 = arith.constant 0 : i32
    %c0_i32_0 = arith.constant 0 : i32
    %c0_i32_1 = arith.constant 0 : i32
    return %arg0, %2, %c0_i32, %c0_i32_0 : i32, i32, i32, i32
  }
  func.func @transform_3(%arg0: i32, %arg1: i32) -> (i32, i32, i32) {
    %c0_i32 = arith.constant 0 : i32
    %c0_i32_0 = arith.constant 0 : i32
    %c0_i32_1 = arith.constant 0 : i32
    %c0_i32_2 = arith.constant 0 : i32
    return %c0_i32, %c0_i32_0, %c0_i32_1 : i32, i32, i32
  }
  func.func @transform_4(%arg0: i32, %arg1: i32) -> (i32, i32) {
    %c0_i32 = arith.constant 0 : i32
    %c0_i32_0 = arith.constant 0 : i32
    %c0_i32_1 = arith.constant 0 : i32
    return %c0_i32, %c0_i32_0 : i32, i32
  }
  func.func @transform_5(%arg0: i32, %arg1: i32) -> (i32, i32) {
    %c0_i32 = arith.constant 0 : i32
    %c0_i32_0 = arith.constant 0 : i32
    %c0_i32_1 = arith.constant 0 : i32
    return %c0_i32, %c0_i32_0 : i32, i32
  }
  func.func @transform_6(%arg0: i32, %arg1: i32) -> (i32, i32, i32, i32) {
    %c0_i32 = arith.constant 0 : i32
    %c0_i32_0 = arith.constant 0 : i32
    %c0_i32_1 = arith.constant 0 : i32
    return %arg0, %arg1, %c0_i32, %c0_i32_0 : i32, i32, i32, i32
  }
}

</mosaic_0001>

<bundles_post_ra>
// kernel: stacked_conv_layers.2
= control target key start
LH: loop header
LB: loop body
LE: loop exit
PB: predicated region body
PF: predicated region fallthrough
CT: control target
= control target key end

     0   :  { %s5375_s21 = smov 0   ;;  %s5377_s22 = smov 0   ;;  %s6687_s0 = inlined_call_operand.vmem [shape: bf16[2,16,18,128], index: 0, kind: input, shape index: {}, may-alias: {0,1,2}]   ;;  %s6688_s1 = inlined_call_operand.vmem [shape: bf16[2,16,18,128], index: 1, kind: input, shape index: {}, may-alias: {0,1,2}]   ;;  %s6689_s2 = inlined_call_operand.vmem [shape: bf16[2,16,18,128], index: 2, kind: input, shape index: {}, may-alias: {0,1,2}]   ;;  %s6690_s3 = inlined_call_operand.vmem [shape: bf16[9,128,128], index: 3, kind: input, shape index: {}]   ;;  %s6691_s4 = inlined_call_operand.vmem [shape: f32[1,128], index: 4, kind: input, shape index: {}]   ;;  %s6692_s5 = inlined_call_operand.vmem [shape: f32[1,128], index: 5, kind: input, shape index: {}]   ;;  %s6693_s6 = inlined_call_operand.vmem [shape: bf16[2,16,18,128], index: 6, kind: output, shape index: {}]  }
   0x1   :  { %s5379_s23 = smov 0   ;;  %s5381_s24 = smov 0  }
   0x2   :  { %s5383_s25 = smov 0  }
   0x3 LB: > { %s25_s26 = sadd.s32 1, %s5326_s23  ;;  %s28_s27 = sadd.s32 1, %s5330_s24  ;;  %s5334_s25 = sphi %s5383_s25, %s16_s25   ;;  %s5330_s24 = sphi %s5381_s24, %s6717_s24   ;;  %s5326_s23 = sphi %s5379_s23, %s6716_s23   ;;  %s5322_s22 = sphi %s5377_s22, %s6715_s22   ;;  %s5318_s21 = sphi %s5375_s21, %s6714_s21  }
   0x4   : > { %p26_p0 = scmp.ge.s32.totalorder %s25_s26, 2  ;;  %p3946_p1 = scmp.ge.s32.totalorder %s5334_s25, 1 }
   0x5   : > { %p298_p2 = scmp.lt.s32.totalorder %s5334_s25, 5 }
   0x6   : > { %s6719_s26 = smov (%p26_p0, %s25_s26), 0  ;;  %s6721_s27 = smov (!%p26_p0, %s28_s27), %s5330_s24 }
   0x7   : > { %p299_p3 = pnand %p3946_p1, %p298_p2  ;;  %p30_p4 = scmp.ge.s32.totalorder %s6721_s27, 2 }
   0x9   : > { %s6723_s27 = smov (%p30_p4, %s6721_s27), 0  ;;  %302 = sbr.rel (%p299_p3) target bundleno = 1027 (0x403), region = 44 }
  0x10   : > { %v5164_v0 = vld [vmem:[%s6690_s3 + $0xc0] sm:$0xff]   ;;  %s5411_s30 = sshll.u32 %s5318_s21, 3  ;;  %p365_p5 = scmp.lt.s32.totalorder %s5322_s22, 1  ;;  %v5166_v2 = vld [vmem:[%s6690_s3 + $0xc8] sm:$0xff]   ;;  %v5168_v4 = vld [vmem:[%s6690_s3 + $0xd0] sm:$0xff]   ;;  %vm1923_vm3 = vcmask 1042432  }
  0x11   : > { %v5165_v1 = vld [vmem:[%s6690_s3] sm:$0xff]   ;;  %4572 = vmatprep.subr.bf16.mxu0 %v5164_v0  ;;  %p367_p6 = scmp.lt.s32.totalorder %s5411_s30, 15  ;;  %v5167_v3 = vld [vmem:[%s6690_s3 + $0x8] sm:$0xff]   ;;  %v5169_v5 = vld [vmem:[%s6690_s3 + $0x10] sm:$0xff]   ;;  %s3950_s20 = sadd.s32 4294967295, %s5411_s30  ;;  %vm1924_vm4 = vcmask 1046532  }
  0x12   : > { %4604 = vmatprep.subr.bf16.mxu1 %v5165_v1  ;;  %4573 = vmatpush3.bf16.msra.mxu0 %v5164_v0  ;;  %s6725_s22 = smov (!%p365_p5, %s5322_s22), 1  ;;  %v5170_v6 = vld [vmem:[%s6690_s3 + $0xd8] sm:$0xff]   ;;  %p377_p7 = scmp.gt.s32.totalorder %s3950_s20, 0  ;;  %v5172_v8 = vld [vmem:[%s6690_s3 + $0xe0] sm:$0xff]   ;;  %v5174_v10 = vld [vmem:[%s6690_s3 + $0xe8] sm:$0xff]  }
  0x13   : > { %4605 = vmatpush3.bf16.msra.mxu1 %v5165_v1  ;;  %4574 = vmatprep.subr.bf16.mxu0 %v5166_v2  ;;  %s368_s15 = scalar_select %p367_p6, %s5411_s30, 15  ;;  %v5171_v7 = vld [vmem:[%s6690_s3 + $0x18] sm:$0xff]   ;;  %v5173_v9 = vld [vmem:[%s6690_s3 + $0x20] sm:$0xff]   ;;  %v5175_v13 = vld [vmem:[%s6690_s3 + $0x28] sm:$0xff]   ;;  %vm1074_vm0 = vsmask.f32 3328 }
  0x14   : > { %4606 = vmatprep.subr.bf16.mxu1 %v5167_v3  ;;  %s5430_s18 = smul.u32 48, %s6725_s22  ;;  %p3951_p8 = scmp.lt.s32.totalorder %s3950_s20, 15  ;;  %v5176_v17 = vld [vmem:[%s6690_s3 + $0xf0] sm:$0xff]   ;;  %v5178_v23 = vld [vmem:[%s6690_s3 + $0xf8] sm:$0xff]   ;;  %v5182_v27 = vld [vmem:[%s6690_s3 + $0x180] sm:$0xff]  }
  0x15   : > { %s5116_s19 = smul.u32 3, %s368_s15  ;;  %s6727_s20 = smov (!%p377_p7, %s3950_s20), 0  ;;  %v5177_v20 = vld [vmem:[%s6690_s3 + $0x30] sm:$0xff]   ;;  %v5179_v26 = vld [vmem:[%s6690_s3 + $0x38] sm:$0xff]   ;;  %v5183_v30 = vld [vmem:[%s6690_s3 + $0x100] sm:$0xff]  }
  0x16   : > { %4575 = vmatpush3.bf16.msra.mxu0 %v5166_v2  ;;  %s4357_s15 = sadd.s32 8, %s5411_s30  ;;  %s6729_s20 = smov (!%p3951_p8, %s6727_s20), 15  ;;  %v5184_v40 = vld [vmem:[%s6690_s3 + $0x188] sm:$0xff]   ;;  %v5188_v49 = vld [vmem:[%s6690_s3 + $0x190] sm:$0xff]   ;;  %v5190_v57 = vld [vmem:[%s6690_s3 + $0x198] sm:$0xff]  }
  0x17   : > { %4607 = vmatpush3.bf16.msra.mxu1 %v5167_v3  ;;  %4576 = vmatprep.subr.bf16.mxu0 %v5168_v4  ;;  %s371_s7 = sadd.s32 %s5430_s18, %s5116_s19  ;;  %p5457_p9 = scmp.lt.s32.totalorder %s4357_s15, 15  ;;  %v5185_v41 = vld [vmem:[%s6690_s3 + $0x108] sm:$0xff]   ;;  %v5189_v50 = vld [vmem:[%s6690_s3 + $0x110] sm:$0xff]   ;;  %v5191_v59 = vld [vmem:[%s6690_s3 + $0x118] sm:$0xff]   ;;  %vm1075_vm1 = vsmask.f32 7440 }
  0x18   : > { %4608 = vmatprep.subr.bf16.mxu1 %v5169_v5  ;;  %s3948_s22 = sshll.u32 %s371_s7, 2  ;;  %s5118_s30 = smul.u32 3, %s6729_s20  ;;  %vm5674_vm2 = vmor %vm1074_vm0, %vm1075_vm1 }
  0x19   : > { %s5443_s12 = scalar_lea.vmem %s6687_s0, %s3948_s22  ;;  %s5452_s19 = scalar_lea.vmem %s6693_s6, %s3948_s22  ;;  %vm5814_vm5 = vmor %vm1923_vm3, %vm1924_vm4 }
  0x1a   : > { %4577 = vmatpush3.bf16.msra.mxu0 %v5168_v4  ;;  %s6731_s15 = smov (!%p5457_p9, %s4357_s15), 15  ;;  %v5467_v11 = vld [vmem:[%s5443_s12] sm:$0xf]  ;;  %v5470_v12 = vld [vmem:[%s5443_s12 + $0x4] sm:$0xf]  ;;  %s385_s20 = sadd.s32 %s5118_s30, %s5430_s18 }
  0x1b   : > { %4609 = vmatpush3.bf16.msra.mxu1 %v5169_v5  ;;  %4578 = vmatprep.subr.bf16.mxu0 %v5170_v6  ;;  %v5478_v14 = vcombine.low %v5467_v11, %v5470_v12  ;;  %s3956_s11 = sshll.u32 %s385_s20, 2  ;;  %v5487_v15 = vld [vmem:[%s5443_s12 + $0xc] sm:$0xf]  ;;  %v5490_v16 = vld [vmem:[%s5443_s12 + $0x10] sm:$0xf]  ;;  %s6733_s15 = smov (!%p5457_p9, %s6731_s15), 15 }
  0x1c   : > { %4610 = vmatprep.subr.bf16.mxu1 %v5171_v7  ;;  %s5483_s16 = scalar_lea.vmem %s6688_s1, %s3956_s11  ;;  %v1102_v18 = vshrl.u32 %v5487_v15, 16  ;;  %v1105_v19 = vshll.u32 %v5487_v15, 16  ;;  %v1111_v21 = vshll.u32 %v5490_v16, 16  ;;  %s5119_s8 = smul.u32 3, %s6733_s15  ;;  %v1115_v22 = vshrl.u32 %v5490_v16, 16 }
  0x1d   : > { %4588 = vmatprep.mubr.bf16.mxu0 %v5478_v14  ;;  %4620 = vmatprep.mubr.bf16.mxu1 %v5478_v14  ;;  %v5527_v32 = vcombine.low %v5487_v15, %v5490_v16  ;;  %v5530_v33 = vld [vmem:[%s5443_s12 + $0x18] sm:$0xf]  ;;  %v5533_v34 = vld [vmem:[%s5443_s12 + $0x1c] sm:$0xf]  ;;  %v1078_v35 = vshrl.u32 %v5467_v11, 16  ;;  %v1081_v36 = vshll.u32 %v5467_v11, 16 }
  0x1e   : > { %4579 = vmatpush3.bf16.msra.mxu0 %v5170_v6  ;;  %s402_s22 = sadd.s32 %s5119_s8, %s5430_s18  ;;  %v1104_v24 = vrot.slane %v1102_v18, 4  ;;  %v1107_v25 = vrot.slane %v1105_v19, 5  ;;  %v5520_v28 = vrot.slane %v1111_v21, 5  ;;  %v1117_v29 = vrot.slane %v1115_v22, 4  ;;  %v5554_v43 = vld [vmem:[%s5443_s12 + $0x24] sm:$0xf] }
  0x1f   : > { %4611 = vmatpush3.bf16.msra.mxu1 %v5171_v7  ;;  %4580 = vmatprep.subr.bf16.mxu0 %v5172_v8  ;;  %s3961_s15 = sshll.u32 %s402_s22, 2  ;;  %v1091_v37 = vshrl.u32 %v5470_v12, 16  ;;  %v5549_v42 = vcombine.low %v5530_v33, %v5533_v34  ;;  %v5557_v44 = vld [vmem:[%s5443_s12 + $0x28] sm:$0xf]  ;;  %v1126_v46 = vshrl.u32 %v5530_v33, 16  ;;  %v1129_v47 = vshll.u32 %v5530_v33, 16 }
  0x20   : > { %4612 = vmatprep.subr.bf16.mxu1 %v5173_v9  ;;  %s5515_s14 = scalar_lea.vmem %s6689_s2, %s3961_s15  ;;  %v1108_v31 = vor.u32 %v1107_v25, %v1104_v24  ;;  %v1118_v39 = vor.u32 %v1117_v29, %v5520_v28  ;;  %v1139_v48 = vshrl.u32 %v5533_v34, 16  ;;  %v1150_v51 = vshrl.u32 %v5554_v43, 16  ;;  %v5574_v53 = vld [vmem:[%s5443_s12 + $0x30] sm:$0xf]  ;;  %v5577_v54 = vld [vmem:[%s5443_s12 + $0x34] sm:$0xf] }
  0x21   : > { %v1153_v52 = vshll.u32 %v5554_v43, 16  ;;  %v5582_v55 = vcombine.low %v5554_v43, %v5557_v44  ;;  %v1163_v56 = vshrl.u32 %v5557_v44, 16  ;;  %v1080_v58 = vrot.slane %v1078_v35, 4  ;;  %v5592_v60 = vld [vmem:[%s5443_s12 + $0x3c] sm:$0xf]  ;;  %v5194_v7 = vld [vmem:[%s6690_s3 + $0x1a0] sm:$0xff]  }
  0x22   : > { %4581 = vmatpush3.bf16.msra.mxu0 %v5172_v8  ;;  %v5538_v38 = vrot.slane %v1108_v31, 4  ;;  %v5559_v45 = vrot.slane %v1118_v39, 4  ;;  %v1174_v61 = vshrl.u32 %v5574_v53, 16  ;;  %v5596_v62 = vld [vmem:[%s5443_s12 + $0x40] sm:$0xf]  ;;  %v1083_v63 = vrot.slane %v1081_v36, 5 }
  0x23   : > { %4613 = vmatpush3.bf16.msra.mxu1 %v5173_v9  ;;  %4582 = vmatprep.subr.bf16.mxu0 %v5174_v10  ;;  %v5600_v0 = vcombine.low %v5574_v53, %v5577_v54  ;;  %v1177_v1 = vshll.u32 %v5574_v53, 16  ;;  %v5604_v2 = vld [vmem:[%s5443_s12 + $0x8] sm:$0x1]  ;;  %v1087_v3 = vshll.u32 %v5470_v12, 16  ;;  %v1187_v4 = vshrl.u32 %v5577_v54, 16  ;;  %p4196_p10 = scmp.le.s32.totalorder %s5318_s21, 0 }
  0x24   : > { %4614 = vmatprep.subr.bf16.mxu1 %v5175_v13  ;;  %v1198_v5 = vshrl.u32 %v5592_v60, 16  ;;  %v1201_v6 = vshll.u32 %v5592_v60, 16  ;;  %v5615_v8 = vld [vmem:[%s5443_s12 + $0x48] sm:$0xf]  ;;  %v1093_v9 = vrot.slane %v1091_v37, 4  ;;  %v1084_v18 = vor.u32 %v1083_v63, %v1080_v58 }
  0x25   : > { %v5623_v19 = vrot.slane %v1087_v3, 5  ;;  %v1097_v22 = vshll.u32 %v5604_v2, 16  ;;  %v5637_v24 = vcombine.low %v5592_v60, %v5596_v62  ;;  %v5196_v25 = vld [vmem:[%s6690_s3 + $0x1a8] sm:$0xff]   ;;  %v5649_v35 = vld [vmem:[%s5443_s12 + $0x20] sm:$0x1]  ;;  %v1128_v36 = vrot.slane %v1126_v46, 4 }
  0x26   : > { %4583 = vmatpush3.bf16.msra.mxu0 %v5174_v10  ;;  %v1131_v37 = vrot.slane %v1129_v47, 5  ;;  %v1135_v39 = vshll.u32 %v5533_v34, 16  ;;  %v5680_v63 = vld [vmem:[%s5443_s12 + $0x2c] sm:$0x1]  ;;  %v1155_v3 = vrot.slane %v1153_v52, 5  ;;  %v1176_v10 = vrot.slane %v1174_v61, 4 }
  0x27   : > { %4615 = vmatpush3.bf16.msra.mxu1 %v5175_v13  ;;  %4584 = vmatprep.subr.bf16.mxu0 %v5176_v17  ;;  %v5195_v13 = vld [vmem:[%s6690_s3 + $0x120] sm:$0xff]   ;;  %v1942_v47 = vrot.slane %v5533_v34, 5  ;;  %vm5337_vm6 = vmmov (!%p4196_p10), 0   ;;  %vm2773_vm7 = vsmask.f32 (!%p4196_p10), 7424  ;;  %vm2898_vm8 = vcmask (!%p4196_p10), 1046528  }
  0x28   : > { %4616 = vmatprep.subr.bf16.mxu1 %v5177_v20  ;;  %v5669_v58 = vrot.slane %v1135_v39, 5  ;;  %v5202_v39 = vld [vmem:[%s6690_s3 + $0x1b8] sm:$0xff]  }
  0x29   : > { %v1944_v34 = vrot.slane %v1942_v47, 4 }
  0x2a   : > { %4585 = vmatpush3.bf16.msra.mxu0 %v5176_v17  ;;  %v1183_v17 = vshll.u32 %v5577_v54, 16 }
  0x2b   : > { %4617 = vmatpush3.bf16.msra.mxu1 %v5177_v20  ;;  %4586 = vmatprep.subr.bf16.mxu0 %v5178_v23  ;;  %v5626_v20 = vld [vmem:[%s5443_s12 + $0x4c] sm:$0xf] }
  0x2c   : > { %4618 = vmatprep.subr.bf16.mxu1 %v5179_v26 }
  0x2e   : > { %4587 = vmatpush3.bf16.msra.mxu0 %v5178_v23  ;;  %v5632_v23 = vld [vmem:[%s5443_s12 + $0x14] sm:$0x1] }
  0x2f   : > { %4619 = vmatpush3.bf16.msra.mxu1 %v5179_v26  ;;  %4636 = vmatprep.subr.bf16.mxu0 %v5182_v27  ;;  %v1094_v26 = vor.u32 %v1093_v9, %v5623_v19  ;;  %v1121_v31 = vshll.u32 %v5632_v23, 16  ;;  %v1159_v9 = vshll.u32 %v5557_v44, 16 }
  0x30   : > { %4668 = vmatprep.subr.bf16.mxu1 %v5183_v30 }
  0x31   : > { %4589 = vmatmul.mubr.bf16.vlgmr.msra.gmra.mrb[0].mxu0 %v5527_v32  ;;  %v1095_v46 = vrot.slane %v1094_v26, 4  ;;  %v1165_v26 = vrot.slane %v1163_v56, 4  ;;  %v5697_v52 = vrot.slane %v1159_v9, 5  ;;  %v1123_v9 = vrot.slane %v1121_v31, 5 }
  0x32   : > { %4621 = vmatmul.mubr.bf16.vlgmr.msra.gmra.mrb[0].mxu1 %v5527_v32  ;;  %4637 = vmatpush3.bf16.msra.mxu0 %v5182_v27  ;;  %v5197_v27 = vld [vmem:[%s6690_s3 + $0x128] sm:$0xff]   ;;  %v1179_v31 = vrot.slane %v1177_v1, 5  ;;  %v1200_v1 = vrot.slane %v1198_v5, 4  ;;  %v5205_v5 = vld [vmem:[%s6690_s3 + $0x140] sm:$0xff]  }
  0x33   : > { %4669 = vmatpush3.bf16.msra.mxu1 %v5183_v30  ;;  %4638 = vmatprep.subr.bf16.mxu0 %v5184_v40  ;;  %v1085_v30 = vrot.slane %v1084_v18, 4  ;;  %v1132_v18 = vor.u32 %v1131_v37, %v1128_v36  ;;  %v1169_v37 = vshll.u32 %v5680_v63, 16 }
  0x34   : > { %4670 = vmatprep.subr.bf16.mxu1 %v5185_v41  ;;  %4592 = vmatprep.mubr.bf16.mxu0 %v5549_v42 }
  0x35   : > { %4624 = vmatprep.mubr.bf16.mxu1 %v5549_v42  ;;  %v1090_v56 = vsel %vm5674_vm2, %v1085_v30, %v5623_v19  ;;  %v1133_v19 = vrot.slane %v1132_v18, 4  ;;  %v1207_v18 = vshll.u32 %v5596_v62, 16 }
  0x36   : > { %4639 = vmatpush3.bf16.msra.mxu0 %v5184_v40  ;;  %v5658_v40 = vcombine.low %v5615_v8, %v5626_v20 }
  0x37   : > { %4671 = vmatpush3.bf16.msra.mxu1 %v5185_v41  ;;  %4640 = vmatprep.subr.bf16.mxu0 %v5188_v49  ;;  %v5661_v41 = vld [vmem:[%s5443_s12 + $0x54] sm:$0xf] }
  0x38   : > { %4672 = vmatprep.subr.bf16.mxu1 %v5189_v50  ;;  %6696 = vst [vmem:[#allocation3_spill] sm:$0xff] %v5661_v41 }
  0x39   : > { %4593 = vmatmul.mubr.bf16.gmra.mrb[4].mxu0 %v5582_v55 }
  0x3a   : > { %4625 = vmatmul.mubr.bf16.gmra.mrb[4].mxu1 %v5582_v55  ;;  %4641 = vmatpush3.bf16.msra.mxu0 %v5188_v49  ;;  %v5664_v49 = vld [vmem:[%s5443_s12 + $0x58] sm:$0xf] }
  0x3b   : > { %4673 = vmatpush3.bf16.msra.mxu1 %v5189_v50  ;;  %4642 = vmatprep.subr.bf16.mxu0 %v5190_v57  ;;  %v1099_v50 = vrot.slane %v1097_v22, 5 }
  0x3c   : > { %4674 = vmatprep.subr.bf16.mxu1 %v5191_v59  ;;  %4596 = vmatprep.mubr.bf16.mxu0 %v5600_v0 }
  0x3d   : > { %4628 = vmatprep.mubr.bf16.mxu1 %v5600_v0  ;;  %v1100_v36 = vsel %vm5674_vm2, %v1095_v46, %v1099_v50  ;;  %v5719_v50 = vld [vmem:[%s5443_s12 + $0x38] sm:$0x1] }
  0x3e   : > { %4643 = vmatpush3.bf16.msra.mxu0 %v5190_v57  ;;  %v1141_v57 = vrot.slane %v1139_v48, 4  ;;  %v1152_v48 = vrot.slane %v1150_v51, 4  ;;  %v5201_v51 = vld [vmem:[%s6690_s3 + $0x130] sm:$0xff]   ;;  %v5721_v46 = vcombine.low %v1090_v56, %v1100_v36  ;;  %v5756_v56 = vrot.slane %v1207_v18, 5 }
  0x3f   : > { %4675 = vmatpush3.bf16.msra.mxu1 %v5191_v59  ;;  %4644 = vmatprep.subr.bf16.mxu0 %v5194_v7  ;;  %v1145_v59 = vshll.u32 %v5649_v35, 16  ;;  %v1246_v36 = vshrl.u32 %v5661_v41, 16 }
  0x40   : > { %4676 = vmatprep.subr.bf16.mxu1 %v5195_v13  ;;  %v1142_v22 = vor.u32 %v1141_v57, %v5669_v58  ;;  %v5203_v57 = vld [vmem:[%s6690_s3 + $0x138] sm:$0xff]   ;;  %v1156_v21 = vor.u32 %v1155_v3, %v1152_v48  ;;  %v5731_v48 = vrot.slane %v1183_v17, 5  ;;  %v1189_v3 = vrot.slane %v1187_v4, 4 }
  0x41   : > { %4597 = vmatmul.mubr.bf16.gmra.mrb[8].mxu0 %v5637_v24  ;;  %v1147_v29 = vrot.slane %v1145_v59, 5  ;;  %v1171_v59 = vrot.slane %v1169_v37, 5  ;;  %v1114_v17 = vsel %vm5674_vm2, %v5538_v38, %v5520_v28  ;;  %v1124_v4 = vsel %vm5674_vm2, %v5559_v45, %v1123_v9 }
  0x42   : > { %4629 = vmatmul.mubr.bf16.gmra.mrb[8].mxu1 %v5637_v24  ;;  %4645 = vmatpush3.bf16.msra.mxu0 %v5194_v7  ;;  %v5200_v7 = vld [vmem:[%s6690_s3 + $0x1b0] sm:$0xff]   ;;  %v1143_v30 = vrot.slane %v1142_v22, 4  ;;  %v1157_v61 = vrot.slane %v1156_v21, 4  ;;  %v5738_v22 = vld [vmem:[%s5443_s12 + $0x44] sm:$0x1]  ;;  %v1203_v21 = vrot.slane %v1201_v6, 5  ;;  %v1138_v45 = vsel %vm5674_vm2, %v1133_v19, %v5669_v58 }
  0x43   : > { %4677 = vmatpush3.bf16.msra.mxu1 %v5195_v13  ;;  %4646 = vmatprep.subr.bf16.mxu0 %v5196_v25  ;;  %v5702_v13 = vcombine.low %v5661_v41, %v5664_v49  ;;  %v6699_v28 = vshrl.u32 %v5596_v62, 16  ;;  %v1190_v6 = vor.u32 %v1189_v3, %v5731_v48  ;;  %v1249_v37 = vshll.u32 %v5661_v41, 16  ;;  %v5207_v19 = vld [vmem:[%s6690_s3 + $0x148] sm:$0xff]  }
  0x44   : > { %4678 = vmatprep.subr.bf16.mxu1 %v5197_v27  ;;  %4600 = vmatprep.mubr.bf16.mxu0 %v5658_v40  ;;  %v5770_v9 = vcombine.low %v1114_v17, %v1124_v4  ;;  %v1231_v58 = vshll.u32 %v5626_v20, 16  ;;  %v5789_v4 = vld [vmem:[%s5443_s12 + $0x50] sm:$0x1] }
  0x45   : > { %4632 = vmatprep.mubr.bf16.mxu1 %v5658_v40  ;;  %v1213_v38 = vrot.slane %v6699_v28, 4  ;;  %v5208_v28 = vld [vmem:[%s6690_s3 + $0x50] sm:$0xff]  }
  0x46   : > { %4647 = vmatpush3.bf16.msra.mxu0 %v5196_v25  ;;  %v1166_v25 = vor.u32 %v1165_v26, %v5697_v52 }
  0x47   : > { %4679 = vmatpush3.bf16.msra.mxu1 %v5197_v27  ;;  %4648 = vmatprep.subr.bf16.mxu0 %v5200_v7  ;;  %v5204_v27 = vld [vmem:[%s6690_s3 + $0x40] sm:$0xff]  }
  0x48   : > { %4680 = vmatprep.subr.bf16.mxu1 %v5201_v51  ;;  %v1167_v26 = vrot.slane %v1166_v25, 4  ;;  %v5206_v25 = vld [vmem:[%s6690_s3 + $0x48] sm:$0xff]  }
  0x49   : > { %4601 = vmatmul.mubr.bf16.gmra.mrb[12].mxu0 %v5702_v13 }
  0x4a   : > { %4633 = vmatmul.mubr.bf16.gmra.mrb[12].mxu1 %v5702_v13  ;;  %4649 = vmatpush3.bf16.msra.mxu0 %v5200_v7  ;;  %v1180_v7 = vor.u32 %v1179_v31, %v1176_v10  ;;  %v1217_v10 = vshll.u32 %v5738_v22, 16  ;;  %v1204_v31 = vor.u32 %v1203_v21, %v1200_v1 }
  0x4b   : > { %4681 = vmatpush3.bf16.msra.mxu1 %v5201_v51  ;;  %4650 = vmatprep.subr.bf16.mxu0 %v5202_v39  ;;  %v1193_v51 = vshll.u32 %v5719_v50, 16 }
  0x4c   : > { %4682 = vmatprep.subr.bf16.mxu1 %v5203_v57  ;;  %4652 = vmatprep.mubr.bf16.mxu0 %v5478_v14  ;;  %v1148_v14 = vsel %vm5674_vm2, %v1143_v30, %v1147_v29  ;;  %v1259_v29 = vshrl.u32 %v5664_v49, 16  ;;  %v1172_v30 = vsel %vm5674_vm2, %v1167_v26, %v1171_v59  ;;  %v1181_v18 = vrot.slane %v1180_v7, 4 }
  0x4d   : > { %4684 = vmatprep.mubr.bf16.mxu1 %v5721_v46  ;;  %v5785_v3 = vcombine.low %v1138_v45, %v1148_v14  ;;  %v1195_v17 = vrot.slane %v1193_v51, 5  ;;  %v6700_v59 = vshrl.u32 %v5615_v8, 16  ;;  %v6701_v26 = vshll.u32 %v5615_v8, 16 }
  0x4e   : > { %4651 = vmatpush3.bf16.msra.mxu0 %v5202_v39  ;;  %v1162_v39 = vsel %vm5674_vm2, %v1157_v61, %v5697_v52  ;;  %v1191_v52 = vrot.slane %v1190_v6, 4  ;;  %v5795_v61 = vrot.slane %v1217_v10, 5  ;;  %v5807_v51 = vrot.slane %v1231_v58, 5  ;;  %v5235_v58 = vld [vmem:[%s6690_s3 + $0xb8] sm:$0xff]  }
  0x4f   : > { %4683 = vmatpush3.bf16.msra.mxu1 %v5203_v57  ;;  %4700 = vmatprep.subr.bf16.mxu0 %v5204_v27  ;;  %v1214_v57 = vor.u32 %v1213_v38, %v5756_v56  ;;  %v1224_v1 = vrot.slane %v6700_v59, 4  ;;  %v1227_v21 = vrot.slane %v6701_v26, 5  ;;  %v5802_v7 = vcombine.low %v1162_v39, %v1172_v30 }
  0x50   : > { %4764 = vmatprep.subr.bf16.mxu1 %v5205_v5  ;;  %v6702_v38 = vshrl.u32 %v5626_v20, 16  ;;  %v1205_v14 = vrot.slane %v1204_v31, 4  ;;  %v1255_v6 = vshll.u32 %v5664_v49, 16  ;;  %v1241_v10 = vshll.u32 %v5789_v4, 16 }
  0x51   : > { %4653 = vmatmul.mubr.bf16.vlgmr.msra.gmra.mrb[16].mxu0 %v5527_v32  ;;  %v5209_v32 = vld [vmem:[%s6690_s3 + $0x150] sm:$0xff]   ;;  %v1248_v39 = vrot.slane %v1246_v36, 4  ;;  %v4108_v30 = vrot.slane %v5467_v11, 9  ;;  %v1196_v36 = vsel %vm5674_vm2, %v1191_v52, %v1195_v17  ;;  %v1928_v31 = vrot.slane %v5470_v12, 5  ;;  %v5211_v11 = vld [vmem:[%s6690_s3 + $0x158] sm:$0xff]  }
  0x52   : > { %4685 = vmatmul.mubr.bf16.vlgmr.msra.gmra.mrb[16].mxu1 %v5770_v9  ;;  %4701 = vmatpush3.bf16.msra.mxu0 %v5204_v27  ;;  %v1237_v45 = vrot.slane %v6702_v38, 4  ;;  %v1215_v27 = vrot.slane %v1214_v57, 4  ;;  %v1931_v57 = vrot.slane %v5604_v2, 5  ;;  %v1228_v59 = vor.u32 %v1227_v21, %v1224_v1  ;;  %v5837_v12 = vld [vmem:[%s5443_s12 + $0x5c] sm:$0x1] }
  0x53   : > { %4765 = vmatpush3.bf16.msra.mxu1 %v5205_v5  ;;  %4702 = vmatprep.subr.bf16.mxu0 %v5206_v25  ;;  %v5210_v5 = vld [vmem:[%s6690_s3 + $0x58] sm:$0xff]   ;;  %v1251_v38 = vrot.slane %v1249_v37, 5  ;;  %v1261_v41 = vrot.slane %v1259_v29, 4  ;;  %v1930_v17 = vrot.slane %v1928_v31, 4 }
  0x54   : > { %4766 = vmatprep.subr.bf16.mxu1 %v5207_v19  ;;  %4656 = vmatprep.mubr.bf16.mxu0 %v5549_v42  ;;  %v1186_v42 = vsel %vm5674_vm2, %v1181_v18, %v5731_v48  ;;  %v1238_v26 = vor.u32 %v1237_v45, %v5807_v51  ;;  %v1257_v48 = vrot.slane %v1255_v6, 5  ;;  %v1929_v18 = vsel %vm5814_vm5, %v4108_v30, %v1928_v31  ;;  %v5212_v45 = vld [vmem:[%s6690_s3 + $0x60] sm:$0xff]  }
  0x55   : > { %4688 = vmatprep.mubr.bf16.mxu1 %v5785_v3  ;;  %v5840_v2 = vcombine.low %v1186_v42, %v1196_v36  ;;  %v1932_v52 = vsel %vm5814_vm5, %v1930_v17, %v1931_v57  ;;  %v1229_v37 = vrot.slane %v1228_v59, 4  ;;  %v1220_v21 = vsel %vm5674_vm2, %v1215_v27, %v5795_v61  ;;  %v5214_v61 = vld [vmem:[%s6690_s3 + $0x68] sm:$0xff]   ;;  %v5216_v36 = vld [vmem:[%s6690_s3 + $0x70] sm:$0xff]  }
  0x56   : > { %4703 = vmatpush3.bf16.msra.mxu0 %v5206_v25  ;;  %v1243_v25 = vrot.slane %v1241_v10, 5  ;;  %v1239_v29 = vrot.slane %v1238_v26, 4  ;;  %v5845_v1 = vcombine.low %v1929_v18, %v1932_v52  ;;  %v1265_v6 = vshll.u32 %v5837_v12, 16 }
  0x57   : > { %4767 = vmatpush3.bf16.msra.mxu1 %v5207_v19  ;;  %4704 = vmatprep.subr.bf16.mxu0 %v5208_v28  ;;  %v1252_v19 = vor.u32 %v1251_v38, %v1248_v39  ;;  %v5215_v39 = vld [vmem:[%s6690_s3 + $0x168] sm:$0xff]   ;;  %v4110_v59 = vrot.slane %v5530_v33, 9  ;;  %v1945_v26 = vrot.slane %v5649_v35, 5  ;;  %v1949_v33 = vrot.slane %v5557_v44, 5  ;;  %v5221_v35 = vld [vmem:[%s6690_s3 + $0x80] sm:$0xff]  }
  0x58   : > { %4768 = vmatprep.subr.bf16.mxu1 %v5209_v32  ;;  %v1267_v10 = vrot.slane %v1265_v6, 5  ;;  %v1956_v44 = vrot.slane %v5577_v54, 5  ;;  %v4111_v52 = vrot.slane %v5554_v43, 9  ;;  %v4112_v54 = vrot.slane %v5574_v53, 9  ;;  %v5225_v53 = vld [vmem:[%s6690_s3 + $0x90] sm:$0xff]  }
  0x59   : > { %4657 = vmatmul.mubr.bf16.gmra.mrb[20].mxu0 %v5582_v55  ;;  %v1210_v55 = vsel %vm5674_vm2, %v1205_v14, %v5756_v56  ;;  %v1253_v14 = vrot.slane %v1252_v19, 4  ;;  %v1943_v18 = vsel %vm5814_vm5, %v4110_v59, %v1942_v47  ;;  %v1946_v17 = vsel %vm5814_vm5, %v1944_v34, %v1945_v26  ;;  %v5223_v19 = vld [vmem:[%s6690_s3 + $0x88] sm:$0xff]   ;;  %v5232_v34 = vld [vmem:[%s6690_s3 + $0x1f0] sm:$0xff]  }
  0x5a   : > { %4689 = vmatmul.mubr.bf16.gmra.mrb[20].mxu1 %v5802_v7  ;;  %4705 = vmatpush3.bf16.msra.mxu0 %v5208_v28  ;;  %v1262_v28 = vor.u32 %v1261_v41, %v1257_v48  ;;  %v5862_v56 = vcombine.low %v1210_v55, %v1220_v21  ;;  %v1234_v41 = vsel %vm5674_vm2, %v1229_v37, %v5807_v51  ;;  %v1951_v37 = vrot.slane %v1949_v33, 4 }
  0x5b   : > { %4769 = vmatpush3.bf16.msra.mxu1 %v5209_v32  ;;  %4706 = vmatprep.subr.bf16.mxu0 %v5210_v5  ;;  %v5213_v32 = vld [vmem:[%s6690_s3 + $0x160] sm:$0xff]   ;;  %v1258_v51 = vsel %vm5674_vm2, %v1253_v14, %v1257_v48  ;;  %v5936_v55 = vcombine.low %v1943_v18, %v1946_v17  ;;  %v1958_v21 = vrot.slane %v1956_v44, 4  ;;  %v1959_v43 = vrot.slane %v5719_v50, 5 }
  0x5c   : > { %4770 = vmatprep.subr.bf16.mxu1 %v5211_v11  ;;  %4660 = vmatprep.mubr.bf16.mxu0 %v5600_v0  ;;  %v1244_v0 = vsel %vm5674_vm2, %v1239_v29, %v1243_v25  ;;  %v1263_v27 = vrot.slane %v1262_v28, 4  ;;  %v5222_v25 = vld [vmem:[%s6690_s3 + $0x1c8] sm:$0xff]   ;;  %v1952_v29 = vrot.slane %v5680_v63, 5  ;;  %v5224_v63 = vld [vmem:[%s6690_s3 + $0x1d0] sm:$0xff]   ;;  %v1963_v6 = vrot.slane %v5596_v62, 5 }
  0x5d   : > { %4692 = vmatprep.mubr.bf16.mxu1 %v5840_v2  ;;  %v5876_v30 = vcombine.low %v1234_v41, %v1244_v0  ;;  %v1970_v62 = vrot.slane %v5626_v20, 5  ;;  %v5226_v41 = vld [vmem:[%s6690_s3 + $0x1d8] sm:$0xff]   ;;  %v4113_v0 = vrot.slane %v5592_v60, 9  ;;  %v4114_v20 = vrot.slane %v5615_v8, 9  ;;  %v5229_v8 = vld [vmem:[%s6690_s3 + $0xa0] sm:$0xff]  }
  0x5e   : > { %4707 = vmatpush3.bf16.msra.mxu0 %v5210_v5  ;;  %v1935_v5 = vrot.slane %v5490_v16, 5  ;;  %v1268_v42 = vsel %vm5674_vm2, %v1263_v27, %v1267_v10  ;;  %v5217_v16 = vld [vmem:[%s6690_s3 + $0x170] sm:$0xff]   ;;  %v1953_v28 = vsel %vm5814_vm5, %v1951_v37, %v1952_v29  ;;  %v1965_v14 = vrot.slane %v1963_v6, 4  ;;  %v5227_v10 = vld [vmem:[%s6690_s3 + $0x98] sm:$0xff]  }
  0x5f   : > { %4771 = vmatpush3.bf16.msra.mxu1 %v5211_v11  ;;  %4708 = vmatprep.subr.bf16.mxu0 %v5212_v45  ;;  %v5893_v57 = vcombine.low %v1258_v51, %v1268_v42  ;;  %v1938_v11 = vrot.slane %v5632_v23, 5  ;;  %v5220_v23 = vld [vmem:[%s6690_s3 + $0x1c0] sm:$0xff]   ;;  %v1966_v27 = vrot.slane %v5738_v22, 5  ;;  %v1973_v60 = vrot.slane %v5789_v4, 5 }
  0x60   : > { %4772 = vmatprep.subr.bf16.mxu1 %v5213_v32  ;;  %v1937_v31 = vrot.slane %v1935_v5, 4  ;;  %v5228_v22 = vld [vmem:[%s6690_s3 + $0x1e0] sm:$0xff]   ;;  %v1964_v51 = vsel %vm5814_vm5, %v4113_v0, %v1963_v6 }
  0x61   : > { %4661 = vmatmul.mubr.bf16.gmra.mrb[24].mxu0 %v5637_v24  ;;  %v4109_v24 = vrot.slane %v5487_v15, 9  ;;  %v5219_v15 = vld [vmem:[%s6690_s3 + $0x178] sm:$0xff]   ;;  %v1967_v42 = vsel %vm5814_vm5, %v1965_v14, %v1966_v27 }
  0x62   : > { %4693 = vmatmul.mubr.bf16.gmra.mrb[24].mxu1 %v5862_v56  ;;  %4709 = vmatpush3.bf16.msra.mxu0 %v5212_v45  ;;  %v1950_v45 = vsel %vm5814_vm5, %v4111_v52, %v1949_v33  ;;  %v5988_v4 = vcombine.low %v1964_v51, %v1967_v42  ;;  %v5236_v33 = vld [vmem:[%s6690_s3 + $0x200] sm:$0xff]  }
  0x63   : > { %4773 = vmatpush3.bf16.msra.mxu1 %v5213_v32  ;;  %4710 = vmatprep.subr.bf16.mxu0 %v5214_v61  ;;  %v1936_v38 = vsel %vm5814_vm5, %v4109_v24, %v1935_v5  ;;  %v5954_v50 = vcombine.low %v1950_v45, %v1953_v28  ;;  %v1957_v32 = vsel %vm5814_vm5, %v4112_v54, %v1956_v44  ;;  %v1972_v5 = vrot.slane %v1970_v62, 4 }
  0x64   : > { %4774 = vmatprep.subr.bf16.mxu1 %v5215_v39  ;;  %4664 = vmatprep.mubr.bf16.mxu0 %v5658_v40  ;;  %v5218_v40 = vld [vmem:[%s6690_s3 + $0x78] sm:$0xff]  }
  0x65   : > { %4696 = vmatprep.mubr.bf16.mxu1 %v5876_v30  ;;  %v1974_v24 = vsel %vm5814_vm5, %v1972_v5, %v1973_v60 }
  0x66   : > { %4711 = vmatpush3.bf16.msra.mxu0 %v5214_v61  ;;  %v1960_v61 = vsel %vm5814_vm5, %v1958_v21, %v1959_v43 }
  0x67   : > { %4775 = vmatpush3.bf16.msra.mxu1 %v5215_v39  ;;  %4712 = vmatprep.subr.bf16.mxu0 %v5216_v36  ;;  %v5970_v39 = vcombine.low %v1957_v32, %v1960_v61 }
  0x68   : > { %4776 = vmatprep.subr.bf16.mxu1 %v5217_v16 }
  0x69   : > { %4665 = vmatmul.mubr.bf16.gmra.mrb[28].mxu0 %v5702_v13  ;;  %v1939_v13 = vsel %vm5814_vm5, %v1937_v31, %v1938_v11  ;;  %v6705_v31 = vld [vmem:[#allocation3_spill] sm:$0xff]  ;;  %v1980_v11 = vrot.slane %v5837_v12, 5 }
  0x6a   : > { %4697 = vmatmul.mubr.bf16.gmra.mrb[28].mxu1 %v5893_v57  ;;  %4713 = vmatpush3.bf16.msra.mxu0 %v5216_v36  ;;  %v5920_v48 = vcombine.low %v1936_v38, %v1939_v13  ;;  %v1977_v36 = vrot.slane %v5664_v49, 5  ;;  %v5230_v49 = vld [vmem:[%s6690_s3 + $0x1e8] sm:$0xff]   ;;  %v4115_v47 = vrot.slane %v6705_v31, 9  ;;  %v5234_v13 = vld [vmem:[%s6690_s3 + $0x1f8] sm:$0xff]  }
  0x6b   : > { %4777 = vmatpush3.bf16.msra.mxu1 %v5217_v16  ;;  %4714 = vmatprep.subr.bf16.mxu0 %v5218_v40  ;;  %v1971_v16 = vsel %vm5814_vm5, %v4114_v20, %v1970_v62 }
  0x6c   : > { %4778 = vmatprep.subr.bf16.mxu1 %v5219_v15  ;;  %4716 = vmatprep.mubr.bf16.mxu0 %v5721_v46  ;;  %v6003_v59 = vcombine.low %v1971_v16, %v1974_v24  ;;  %v1978_v12 = vsel %vm5814_vm5, %v4115_v47, %v1977_v36 }
  0x6d   : > { %4780 = vmatprep.mubr.bf16.mxu1 %v5845_v1 }
  0x6e   : > { %4715 = vmatpush3.bf16.msra.mxu0 %v5218_v40  ;;  %v1979_v40 = vrot.slane %v1977_v36, 4 }
  0x6f   : > { %4779 = vmatpush3.bf16.msra.mxu1 %v5219_v15  ;;  %4732 = vmatprep.subr.bf16.mxu0 %v5220_v23  ;;  %v5231_v15 = vld [vmem:[%s6690_s3 + $0xa8] sm:$0xff]  }
  0x70   : > { %4796 = vmatprep.subr.bf16.mxu1 %v5221_v35  ;;  %v1981_v26 = vsel %vm5814_vm5, %v1979_v40, %v1980_v11 }
  0x71   : > { %4717 = vmatmul.mubr.bf16.vlgmr.msra.gmra.mrb[32].mxu0 %v5770_v9  ;;  %v6018_v38 = vcombine.low %v1978_v12, %v1981_v26 }
  0x72   : > { %4781 = vmatmul.mubr.bf16.vlgmr.msra.gmra.mrb[32].mxu1 %v5920_v48  ;;  %4733 = vmatpush3.bf16.msra.mxu0 %v5220_v23  ;;  %v5233_v23 = vld [vmem:[%s6690_s3 + $0xb0] sm:$0xff]  }
  0x73   : > { %4797 = vmatpush3.bf16.msra.mxu1 %v5221_v35  ;;  %4734 = vmatprep.subr.bf16.mxu0 %v5222_v25  ;;  %v5237_v35 = vld [vmem:[%s6690_s3 + $0x208] sm:$0xff]  }
  0x74   : > { %4798 = vmatprep.subr.bf16.mxu1 %v5223_v19  ;;  %4720 = vmatprep.mubr.bf16.mxu0 %v5785_v3 }
  0x75   : > { %4784 = vmatprep.mubr.bf16.mxu1 %v5936_v55 }
  0x76   : > { %4735 = vmatpush3.bf16.msra.mxu0 %v5222_v25 }
  0x77   : > { %4799 = vmatpush3.bf16.msra.mxu1 %v5223_v19  ;;  %4736 = vmatprep.subr.bf16.mxu0 %v5224_v63 }
  0x78   : > { %4800 = vmatprep.subr.bf16.mxu1 %v5225_v53 }
  0x79   : > { %4721 = vmatmul.mubr.bf16.gmra.mrb[36].mxu0 %v5802_v7 }
  0x7a   : > { %4785 = vmatmul.mubr.bf16.gmra.mrb[36].mxu1 %v5954_v50  ;;  %4737 = vmatpush3.bf16.msra.mxu0 %v5224_v63 }
  0x7b   : > { %4801 = vmatpush3.bf16.msra.mxu1 %v5225_v53  ;;  %4738 = vmatprep.subr.bf16.mxu0 %v5226_v41 }
  0x7c   : > { %4802 = vmatprep.subr.bf16.mxu1 %v5227_v10  ;;  %4724 = vmatprep.mubr.bf16.mxu0 %v5840_v2 }
  0x7d   : > { %4788 = vmatprep.mubr.bf16.mxu1 %v5970_v39 }
  0x7e   : > { %4739 = vmatpush3.bf16.msra.mxu0 %v5226_v41 }
  0x7f   : > { %4803 = vmatpush3.bf16.msra.mxu1 %v5227_v10  ;;  %4740 = vmatprep.subr.bf16.mxu0 %v5228_v22 }
  0x80   : > { %4804 = vmatprep.subr.bf16.mxu1 %v5229_v8 }
  0x81   : > { %4725 = vmatmul.mubr.bf16.gmra.mrb[40].mxu0 %v5862_v56 }
  0x82   : > { %4789 = vmatmul.mubr.bf16.gmra.mrb[40].mxu1 %v5988_v4  ;;  %4741 = vmatpush3.bf16.msra.mxu0 %v5228_v22 }
  0x83   : > { %4805 = vmatpush3.bf16.msra.mxu1 %v5229_v8  ;;  %4742 = vmatprep.subr.bf16.mxu0 %v5230_v49 }
  0x84   : > { %4806 = vmatprep.subr.bf16.mxu1 %v5231_v15  ;;  %4728 = vmatprep.mubr.bf16.mxu0 %v5876_v30 }
  0x85   : > { %4792 = vmatprep.mubr.bf16.mxu1 %v6003_v59 }
  0x86   : > { %4743 = vmatpush3.bf16.msra.mxu0 %v5230_v49 }
  0x87   : > { %4807 = vmatpush3.bf16.msra.mxu1 %v5231_v15  ;;  %4744 = vmatprep.subr.bf16.mxu0 %v5232_v34 }
  0x88   : > { %4808 = vmatprep.subr.bf16.mxu1 %v5233_v23 }
  0x89   : > { %4729 = vmatmul.mubr.bf16.gmra.mrb[44].mxu0 %v5893_v57 }
  0x8a   : > { %4793 = vmatmul.mubr.bf16.gmra.mrb[44].mxu1 %v6018_v38  ;;  %4745 = vmatpush3.bf16.msra.mxu0 %v5232_v34 }
  0x8b   : > { %4809 = vmatpush3.bf16.msra.mxu1 %v5233_v23  ;;  %4746 = vmatprep.subr.bf16.mxu0 %v5234_v13 }
  0x8c   : > { %4810 = vmatprep.subr.bf16.mxu1 %v5235_v58  ;;  %4748 = vmatprep.mubr.bf16.mxu0 %v5721_v46  ;;  %v5238_v46 = vld [vmem:[%s6690_s3 + $0x210] sm:$0xff]  }
  0x8d   : > { %4812 = vmatprep.mubr.bf16.mxu1 %v5845_v1 }
  0x8e   : > { %4747 = vmatpush3.bf16.msra.mxu0 %v5234_v13 }
  0x8f   : > { %4811 = vmatpush3.bf16.msra.mxu1 %v5235_v58  ;;  %4828 = vmatprep.subr.bf16.mxu0 %v5236_v33 }
  0x90   : > { %4980 = vmatprep.subr.bf16.mxu1 %v5236_v33 }
  0x91   : > { %4749 = vmatmul.mubr.bf16.vlgmr.msra.gmra.mrb[48].mxu0 %v5770_v9  ;;  %v5239_v9 = vld [vmem:[%s6690_s3 + $0x218] sm:$0xff]  }
  0x92   : > { %4813 = vmatmul.mubr.bf16.vlgmr.msra.gmra.mrb[48].mxu1 %v5920_v48  ;;  %4829 = vmatpush3.bf16.msra.mxu0 %v5236_v33 }
  0x93   : > { %4988 = vmatpush3.bf16.msra.mxu1 %v5236_v33  ;;  %4830 = vmatprep.subr.bf16.mxu0 %v5237_v35 }
  0x94   : > { %4981 = vmatprep.subr.bf16.mxu1 %v5237_v35  ;;  %4752 = vmatprep.mubr.bf16.mxu0 %v5785_v3  ;;  %v5240_v3 = vld [vmem:[%s6690_s3 + $0x220] sm:$0xff]  }
  0x95   : > { %4816 = vmatprep.mubr.bf16.mxu1 %v5936_v55 }
  0x96   : > { %4831 = vmatpush3.bf16.msra.mxu0 %v5237_v35 }
  0x97   : > { %4989 = vmatpush3.bf16.msra.mxu1 %v5237_v35  ;;  %4832 = vmatprep.subr.bf16.mxu0 %v5238_v46 }
  0x98   : > { %4982 = vmatprep.subr.bf16.mxu1 %v5238_v46 }
  0x99   : > { %4753 = vmatmul.mubr.bf16.gmra.mrb[32].mxu0 %v5802_v7  ;;  %v5241_v7 = vld [vmem:[%s6690_s3 + $0x228] sm:$0xff]  }
  0x9a   : > { %4817 = vmatmul.mubr.bf16.gmra.mrb[52].mxu1 %v5954_v50  ;;  %4833 = vmatpush3.bf16.msra.mxu0 %v5238_v46 }
  0x9b   : > { %4990 = vmatpush3.bf16.msra.mxu1 %v5238_v46  ;;  %4834 = vmatprep.subr.bf16.mxu0 %v5239_v9 }
  0x9c   : > { %4983 = vmatprep.subr.bf16.mxu1 %v5239_v9  ;;  %4756 = vmatprep.mubr.bf16.mxu0 %v5840_v2  ;;  %v5242_v2 = vld [vmem:[%s6690_s3 + $0x230] sm:$0xff]  }
  0x9d   : > { %4820 = vmatprep.mubr.bf16.mxu1 %v5970_v39 }
  0x9e   : > { %4835 = vmatpush3.bf16.msra.mxu0 %v5239_v9 }
  0x9f   : > { %4991 = vmatpush3.bf16.msra.mxu1 %v5239_v9  ;;  %4836 = vmatprep.subr.bf16.mxu0 %v5240_v3 }
  0xa0   : > { %4984 = vmatprep.subr.bf16.mxu1 %v5240_v3 }
  0xa1   : > { %4757 = vmatmul.mubr.bf16.gmra.mrb[36].mxu0 %v5862_v56  ;;  %v5243_v56 = vld [vmem:[%s6690_s3 + $0x238] sm:$0xff]  }
  0xa2   : > { %4821 = vmatmul.mubr.bf16.gmra.mrb[56].mxu1 %v5988_v4  ;;  %4837 = vmatpush3.bf16.msra.mxu0 %v5240_v3 }
  0xa3   : > { %4992 = vmatpush3.bf16.msra.mxu1 %v5240_v3  ;;  %4838 = vmatprep.subr.bf16.mxu0 %v5241_v7 }
  0xa4   : > { %4985 = vmatprep.subr.bf16.mxu1 %v5241_v7  ;;  %4760 = vmatprep.mubr.bf16.mxu0 %v5876_v30 }
  0xa5   : > { %4824 = vmatprep.mubr.bf16.mxu1 %v6003_v59 }
  0xa6   : > { %4839 = vmatpush3.bf16.msra.mxu0 %v5241_v7 }
  0xa7   : > { %4993 = vmatpush3.bf16.msra.mxu1 %v5241_v7  ;;  %4840 = vmatprep.subr.bf16.mxu0 %v5242_v2 }
  0xa8   : > { %4986 = vmatprep.subr.bf16.mxu1 %v5242_v2 }
  0xa9   : > { %4761 = vmatmul.mubr.bf16.gmra.mrb[40].mxu0 %v5893_v57 }
  0xaa   : > { %4825 = vmatmul.mubr.bf16.gmra.mrb[60].mxu1 %v6018_v38  ;;  %4841 = vmatpush3.bf16.msra.mxu0 %v5242_v2 }
  0xab   : > { %4994 = vmatpush3.bf16.msra.mxu1 %v5242_v2  ;;  %4842 = vmatprep.subr.bf16.mxu0 %v5243_v56 }
  0xac   : > { %4987 = vmatprep.subr.bf16.mxu1 %v5243_v56  ;;  %4844 = vmatprep.mubr.bf16.mxu0 %v5845_v1 }
  0xad   : > { %4852 = vmatprep.mubr.bf16.mxu1 %v5970_v39 }
  0xae   : > { %4843 = vmatpush3.bf16.msra.mxu0 %v5243_v56 }
  0xaf   : > { %4995 = vmatpush3.bf16.msra.mxu1 %v5243_v56 }
  0xb1   : > { %4845 = vmatmul.mubr.bf16.vlgmr.msra.gmra.mrb[52].mxu0 %v5920_v48 }
  0xb2   : > { %4853 = vmatmul.mubr.bf16.vlgmr.msra.gmra.mrb[52].mxu1 %v5988_v4  ;;  %4848 = vmatprep.mubr.bf16.mxu0 %v5936_v55 }
  0xb3   : > { %4856 = vmatprep.mubr.bf16.mxu1 %v6003_v59 }
  0xb9   : > { %4849 = vmatmul.mubr.bf16.gmra.mrb[56].mxu0 %v5954_v50 }
  0xba   : > { %4857 = vmatmul.mubr.bf16.gmra.mrb[56].mxu1 %v6018_v38 }
 0x104   : > { %v4590_v30 = vpop.f32.mrb[0].mxu0 }
 0x105   : > { %v592_v57 = vpop.f32.mrb[1].mxu0  ;;  %v4622_v18 = vpop.f32.mrb[0].mxu1 }
 0x106   : > { %v4591_v1 = vpop.f32.mrb[2].mxu0  ;;  %v769_v17 = vpop.f32.mrb[1].mxu1 }
 0x107   : > { %v595_v44 = vpop.f32.mrb[3].mxu0  ;;  %v844_v25 = vadd.f32 %v4590_v30, %v769_v17  ;;  %v4623_v52 = vpop.f32.mrb[2].mxu1 }
 0x108   : > { %v772_v37 = vpop.f32.mrb[3].mxu1 }
 0x109   : > { %v845_v48 = vadd.f32 %v4591_v1, %v772_v37 }
 0x10c   : > { %v4594_v29 = vpop.f32.mrb[4].mxu0 }
 0x10d   : > { %v608_v19 = vpop.f32.mrb[5].mxu0  ;;  %v4626_v54 = vpop.f32.mrb[4].mxu1 }
 0x10e   : > { %v846_v55 = vadd.f32 %v4622_v18, %v608_v19  ;;  %v4595_v21 = vpop.f32.mrb[6].mxu0  ;;  %v785_v43 = vpop.f32.mrb[5].mxu1 }
 0x10f   : > { %v611_v63 = vpop.f32.mrb[7].mxu0  ;;  %v848_v45 = vadd.f32 %v4594_v29, %v785_v43  ;;  %v4627_v28 = vpop.f32.mrb[6].mxu1 }
 0x110   : > { %v847_v6 = vadd.f32 %v4623_v52, %v611_v63  ;;  %v788_v53 = vpop.f32.mrb[7].mxu1 }
 0x111   : > { %v6076_v50 = vadd.f32 %v4595_v21, %v788_v53 }
 0x114   : > { %v4598_v32 = vpop.f32.mrb[8].mxu0 }
 0x115   : > { %v624_v61 = vpop.f32.mrb[9].mxu0  ;;  %v4630_v62 = vpop.f32.mrb[8].mxu1 }
 0x116   : > { %v850_v41 = vadd.f32 %v4626_v54, %v624_v61  ;;  %v4599_v0 = vpop.f32.mrb[10].mxu0  ;;  %v801_v14 = vpop.f32.mrb[9].mxu1 }
 0x117   : > { %v627_v27 = vpop.f32.mrb[11].mxu0  ;;  %v6078_v10 = vadd.f32 %v4598_v32, %v801_v14  ;;  %v4631_v39 = vpop.f32.mrb[10].mxu1 }
 0x118   : > { %v851_v20 = vadd.f32 %v4627_v28, %v627_v27  ;;  %v804_v5 = vpop.f32.mrb[11].mxu1 }
 0x119   : > { %v6080_v60 = vadd.f32 %v4599_v0, %v804_v5 }
 0x11c   : > { %v4602_v22 = vpop.f32.mrb[12].mxu0 }
 0x11d   : > { %v640_v51 = vpop.f32.mrb[13].mxu0  ;;  %v4634_v42 = vpop.f32.mrb[12].mxu1 }
 0x11e   : > { %v854_v36 = vadd.f32 %v4630_v62, %v640_v51  ;;  %v4603_v8 = vpop.f32.mrb[14].mxu0  ;;  %v817_v4 = vpop.f32.mrb[13].mxu1 }
 0x11f   : > { %v643_v16 = vpop.f32.mrb[15].mxu0  ;;  %v856_v24 = vadd.f32 %v4602_v22, %v817_v4  ;;  %v4635_v49 = vpop.f32.mrb[14].mxu1 }
 0x120   : > { %v855_v31 = vadd.f32 %v4631_v39, %v643_v16  ;;  %v820_v47 = vpop.f32.mrb[15].mxu1 }
 0x121   : > { %v857_v40 = vadd.f32 %v4603_v8, %v820_v47 }
 0x124   : > { %v4654_v11 = vpop.f32.mrb[16].mxu0 }
 0x125   : > { %v1046_v15 = vadd.f32 %v4654_v11, %v592_v57  ;;  %v971_v59 = vpop.f32.mrb[17].mxu0  ;;  %v4686_v34 = vpop.f32.mrb[16].mxu1 }
 0x126   : > { %v4655_v12 = vpop.f32.mrb[18].mxu0  ;;  %v1400_v26 = vpop.f32.mrb[17].mxu1 }
 0x127   : > { %v1047_v23 = vadd.f32 %v4655_v12, %v595_v44  ;;  %v973_v38 = vpop.f32.mrb[19].mxu0  ;;  %v6082_v13 = vadd.f32 %v1400_v26, %v1046_v15  ;;  %v4687_v58 = vpop.f32.mrb[18].mxu1 }
 0x128   : > { %v1403_v33 = vpop.f32.mrb[19].mxu1 }
 0x129   : > { %v6084_v35 = vadd.f32 %v1403_v33, %v1047_v23 }
 0x12c   : > { %v4658_v46 = vpop.f32.mrb[20].mxu0 }
 0x12d   : > { %v1050_v9 = vadd.f32 %v4658_v46, %v846_v55  ;;  %v985_v3 = vpop.f32.mrb[21].mxu0  ;;  %v4690_v7 = vpop.f32.mrb[20].mxu1 }
 0x12e   : > { %v1048_v2 = vadd.f32 %v985_v3, %v844_v25  ;;  %v4659_v56 = vpop.f32.mrb[22].mxu0  ;;  %v1416_v30 = vpop.f32.mrb[21].mxu1 }
 0x12f   : > { %v1051_v57 = vadd.f32 %v4659_v56, %v847_v6  ;;  %v988_v18 = vpop.f32.mrb[23].mxu0  ;;  %v6086_v1 = vadd.f32 %v1416_v30, %v1050_v9  ;;  %v4691_v17 = vpop.f32.mrb[22].mxu1 }
 0x130   : > { %v6088_v44 = vadd.f32 %v4686_v34, %v1048_v2  ;;  %v1049_v52 = vadd.f32 %v988_v18, %v845_v48  ;;  %v1419_v37 = vpop.f32.mrb[23].mxu1 }
 0x131   : > { %v6090_v29 = vadd.f32 %v1419_v37, %v1051_v57 }
 0x132   : > { %v6092_v19 = vadd.f32 %v4687_v58, %v1049_v52 }
 0x134   : > { %v4662_v54 = vpop.f32.mrb[24].mxu0 }
 0x135   : > { %v1054_v55 = vadd.f32 %v4662_v54, %v850_v41  ;;  %v1001_v21 = vpop.f32.mrb[25].mxu0  ;;  %v4694_v43 = vpop.f32.mrb[24].mxu1 }
 0x136   : > { %v1052_v25 = vadd.f32 %v1001_v21, %v848_v45  ;;  %v4663_v63 = vpop.f32.mrb[26].mxu0  ;;  %v1432_v28 = vpop.f32.mrb[25].mxu1 }
 0x137   : > { %v1055_v6 = vadd.f32 %v4663_v63, %v851_v20  ;;  %v1004_v53 = vpop.f32.mrb[27].mxu0  ;;  %v6094_v32 = vadd.f32 %v1432_v28, %v1054_v55  ;;  %v4695_v61 = vpop.f32.mrb[26].mxu1 }
 0x138   : > { %v6096_v62 = vadd.f32 %v4690_v7, %v1052_v25  ;;  %v1053_v48 = vadd.f32 %v1004_v53, %v6076_v50  ;;  %v1435_v0 = vpop.f32.mrb[27].mxu1 }
 0x139   : > { %v6099_v14 = vadd.f32 %v1435_v0, %v1055_v6 }
 0x13a   : > { %v6101_v27 = vadd.f32 %v4691_v17, %v1053_v48 }
 0x13c   : > { %v4666_v41 = vpop.f32.mrb[28].mxu0 }
 0x13d   : > { %v1058_v39 = vadd.f32 %v4666_v41, %v854_v36  ;;  %v4698_v5 = vpop.f32.mrb[28].mxu1  ;;  %v1017_v45 = vpop.f32.mrb[29].mxu0 }
 0x13e   : > { %v1493_v22 = vadd.f32 %v4698_v5, %v856_v24  ;;  %v1056_v20 = vadd.f32 %v1017_v45, %v6078_v10  ;;  %v1448_v51 = vpop.f32.mrb[29].mxu1  ;;  %v4667_v42 = vpop.f32.mrb[30].mxu0 }
 0x13f   : > { %v6104_v8 = vadd.f32 %v1448_v51, %v1058_v39  ;;  %v1059_v4 = vadd.f32 %v4667_v42, %v855_v31  ;;  %v4699_v16 = vpop.f32.mrb[30].mxu1  ;;  %v1020_v49 = vpop.f32.mrb[31].mxu0 }
 0x140   : > { %v6106_v50 = vadd.f32 %v4694_v43, %v1056_v20  ;;  %v1494_v47 = vadd.f32 %v4699_v16, %v857_v40  ;;  %v1057_v11 = vadd.f32 %v1020_v49, %v6080_v60  ;;  %v1451_v15 = vpop.f32.mrb[31].mxu1 }
 0x141   : > { %v6109_v59 = vadd.f32 %v1451_v15, %v1059_v4 }
 0x142   : > { %v6111_v36 = vadd.f32 %v4695_v61, %v1057_v11 }
 0x145   : > { %v4782_v24 = vpop.f32.mrb[32].mxu1 }
 0x146   : > { %v2113_v34 = vpop.f32.mrb[33].mxu1 }
 0x147   : > { %v4783_v10 = vpop.f32.mrb[34].mxu1 }
 0x148   : > { %v2116_v12 = vpop.f32.mrb[35].mxu1 }
 0x14d   : > { %v4786_v26 = vpop.f32.mrb[36].mxu1 }
 0x14e   : > { %v2129_v23 = vpop.f32.mrb[37].mxu1 }
 0x14f   : > { %v4787_v38 = vpop.f32.mrb[38].mxu1 }
 0x150   : > { %v2132_v31 = vpop.f32.mrb[39].mxu1 }
 0x155   : > { %v6113_v58 = vpop.f32.mrb[40].mxu1 }
 0x156   : > { %v2145_v33 = vpop.f32.mrb[41].mxu1 }
 0x157   : > { %v6115_v46 = vpop.f32.mrb[42].mxu1 }
 0x158   : > { %v2148_v40 = vpop.f32.mrb[43].mxu1 }
 0x15c   : > { %v4730_v60 = vpop.f32.mrb[44].mxu0 }
 0x15d   : > { %v1658_v9 = vpop.f32.mrb[45].mxu0  ;;  %v4794_v3 = vpop.f32.mrb[44].mxu1 }
 0x15e   : > { %v1697_v7 = vadd.f32 %v1658_v9, %v1493_v22  ;;  %v4731_v2 = vpop.f32.mrb[46].mxu0  ;;  %v2161_v56 = vpop.f32.mrb[45].mxu1 }
 0x15f   : > { %v1661_v30 = vpop.f32.mrb[47].mxu0  ;;  %v4795_v57 = vpop.f32.mrb[46].mxu1 }
 0x160   : > { %v1698_v18 = vadd.f32 %v1661_v30, %v1494_v47  ;;  %v2206_v17 = vadd.f32 %v4794_v3, %v1697_v7  ;;  %v2164_v52 = vpop.f32.mrb[47].mxu1 }
 0x162   : > { %v2207_v37 = vadd.f32 %v4795_v57, %v1698_v18 }
 0x164   : > { %v4750_v54 = vpop.f32.mrb[48].mxu0 }
 0x165   : > { %v1887_v55 = vadd.f32 %v4750_v54, %v6082_v13  ;;  %v1812_v21 = vpop.f32.mrb[49].mxu0  ;;  %v4814_v43 = vpop.f32.mrb[48].mxu1 }
 0x166   : > { %v4751_v25 = vpop.f32.mrb[50].mxu0  ;;  %v2323_v63 = vpop.f32.mrb[49].mxu1 }
 0x167   : > { %v1888_v28 = vadd.f32 %v4751_v25, %v6084_v35  ;;  %v1814_v6 = vpop.f32.mrb[51].mxu0  ;;  %v4815_v53 = vpop.f32.mrb[50].mxu1  ;;  %v2192_v61 = vadd.f32 %v2113_v34, %v1887_v55 }
 0x168   : > { %v2326_v48 = vpop.f32.mrb[51].mxu1 }
 0x169   : > { %v2193_v0 = vadd.f32 %v2116_v12, %v1888_v28 }
 0x16c   : > { %v4754_v41 = vpop.f32.mrb[32].mxu0 }
 0x16d   : > { %v4998_v39 = vadd.f32 %v4754_v41, %v6086_v1  ;;  %v1826_v5 = vpop.f32.mrb[33].mxu0 }
 0x16e   : > { %v5001_v45 = vadd.f32 %v1826_v5, %v6088_v44  ;;  %v4755_v22 = vpop.f32.mrb[34].mxu0 }
 0x16f   : > { %v5004_v13 = vadd.f32 %v4755_v22, %v6090_v29  ;;  %v2196_v20 = vadd.f32 %v4998_v39, %v2129_v23  ;;  %v1829_v51 = vpop.f32.mrb[35].mxu0 }
 0x170   : > { %v5007_v42 = vadd.f32 %v1829_v51, %v6092_v19  ;;  %v2194_v4 = vadd.f32 %v5001_v45, %v4782_v24 }
 0x171   : > { %v2400_v35 = vadd.f32 %v4814_v43, %v2196_v20  ;;  %v2197_v16 = vadd.f32 %v5004_v13, %v2132_v31 }
 0x172   : > { %v2398_v49 = vadd.f32 %v2323_v63, %v2194_v4  ;;  %v2195_v47 = vadd.f32 %v5007_v42, %v4783_v10 }
 0x173   : > { %v6123_v11 = vadd.f32 %v4815_v53, %v2197_v16 }
 0x174   : > { %v6125_v15 = vadd.f32 %v2326_v48, %v2195_v47  ;;  %v4758_v1 = vpop.f32.mrb[36].mxu0  ;;  %v5336_v47 = vmov (!%p4196_p10), 0.0  }
 0x175   : > { %v5010_v34 = vadd.f32 %v4758_v1, %v6094_v32  ;;  %v1842_v44 = vpop.f32.mrb[37].mxu0  ;;  %4880 = vmatprep.subr.bf16.mxu0 (!%p4196_p10), %v5336_v47  ;;  %4860 = vmatprep.subr.bf16.mxu1 (!%p4196_p10), %v5336_v47  ;;  %v5246_v1 = vld [vmem:[%s6690_s3 + $0x50] sm:$0xff] (!%p4196_p10)  }
 0x176   : > { %v5013_v12 = vadd.f32 %v1842_v44, %v6096_v62  ;;  %v4759_v29 = vpop.f32.mrb[38].mxu0  ;;  %4896 = vmatprep.mubr.msk.bf16.mxu0 (!%p4196_p10), %vm5337_vm6, %v5336_v47  ;;  %4876 = vmatprep.mubr.msk.bf16.mxu1 (!%p4196_p10), %vm5337_vm6, %v5336_v47  ;;  %v5247_v44 = vld [vmem:[%s6690_s3 + $0x58] sm:$0xff] (!%p4196_p10)  }
 0x177   : > { %v2200_v23 = vadd.f32 %v5010_v34, %v2145_v33  ;;  %v5016_v60 = vadd.f32 %v4759_v29, %v6099_v14  ;;  %v1845_v19 = vpop.f32.mrb[39].mxu0  ;;  %v5251_v34 = vld [vmem:[%s6690_s3 + $0x8] sm:$0xff] (!%p4196_p10)   ;;  %v6173_v29 = vld [vmem:[%s5483_s16] sm:$0xff] (!%p4196_p10)  }
 0x178   : > { %v2198_v24 = vadd.f32 %v5013_v12, %v4786_v26  ;;  %v5019_v31 = vadd.f32 %v1845_v19, %v6101_v27  ;;  %v5253_v12 = vld [vmem:[%s6690_s3 + $0x10] sm:$0xff] (!%p4196_p10)   ;;  %v5250_v19 = vld [vmem:[%s6690_s3 + $0x68] sm:$0xff] (!%p4196_p10)  }
 0x179   : > { %v2201_v9 = vadd.f32 %v5016_v60, %v2148_v40  ;;  %v5255_v60 = vld [vmem:[%s6690_s3 + $0x18] sm:$0xff] (!%p4196_p10)  }
 0x17a   : > { %v2199_v10 = vadd.f32 %v5019_v31, %v4787_v38  ;;  %v2777_v31 = vshll.u32 (!%p4196_p10), %v6173_v29, 16 }
 0x17c   : > { %v4762_v3 = vpop.f32.mrb[40].mxu0 }
 0x17d   : > { %v5022_v7 = vadd.f32 %v4762_v3, %v6104_v8  ;;  %v4826_v2 = vpop.f32.mrb[60].mxu1  ;;  %v1858_v30 = vpop.f32.mrb[41].mxu0  ;;  %v2775_v3 = vshrl.u32 (!%p4196_p10), %v6173_v29, 16 }
 0x17e   : > { %v5025_v32 = vadd.f32 %v1858_v30, %v6106_v50  ;;  %v2371_v57 = vpop.f32.mrb[61].mxu1  ;;  %v4763_v18 = vpop.f32.mrb[42].mxu0  ;;  %v5261_v30 = vld [vmem:[%s6690_s3 + $0x28] sm:$0xff] (!%p4196_p10)  }
 0x17f   : > { %v2204_v62 = vadd.f32 %v5022_v7, %v2161_v56  ;;  %v2410_v54 = vadd.f32 %v2371_v57, %v2206_v17  ;;  %v5028_v33 = vadd.f32 %v4763_v18, %v6109_v59  ;;  %v4827_v14 = vpop.f32.mrb[62].mxu1  ;;  %v1861_v55 = vpop.f32.mrb[43].mxu0  ;;  %v2779_v7 = vrot.slane (!%p4196_p10), %v2777_v31, 1 }
 0x180   : > { %v2202_v26 = vadd.f32 %v5025_v32, %v6113_v58  ;;  %v5031_v27 = vadd.f32 %v1861_v55, %v6111_v36  ;;  %v2374_v38 = vpop.f32.mrb[63].mxu1  ;;  %v5254_v32 = vld [vmem:[%s6690_s3 + $0x78] sm:$0xff] (!%p4196_p10)   ;;  %v5260_v55 = vld [vmem:[%s6690_s3 + $0x88] sm:$0xff] (!%p4196_p10)  }
 0x181   : > { %2424 = vst [vmem:[#allocation2 + $0x70] sm:$0xff] %v2410_v54  ;;  %v2205_v40 = vadd.f32 %v5028_v33, %v2164_v52  ;;  %v2411_v8 = vadd.f32 %v2374_v38, %v2207_v37  ;;  %v2780_v57 = vor.u32 (!%p4196_p10), %v2779_v7, %v2775_v3  ;;  %v5258_v33 = vld [vmem:[%s6690_s3 + $0x80] sm:$0xff] (!%p4196_p10)   ;;  %v5265_v14 = vld [vmem:[%s6690_s3 + $0x38] sm:$0xff] (!%p4196_p10)  }
 0x182   : > { %v2203_v21 = vadd.f32 %v5031_v27, %v6115_v46  ;;  %v5264_v27 = vld [vmem:[%s6690_s3 + $0x98] sm:$0xff] (!%p4196_p10)   ;;  %v5266_v38 = vld [vmem:[%s6690_s3 + $0xa0] sm:$0xff] (!%p4196_p10)  }
 0x183   : > { %2425 = vst [vmem:[#allocation2 + $0x78] sm:$0xff] %v2411_v8  ;;  %v5268_v8 = vld [vmem:[%s6690_s3 + $0xb0] sm:$0xff] (!%p4196_p10)  }
 0x184   : > { %v4846_v50 = vpop.f32.mrb[52].mxu0 }
 0x185   : > { %v2600_v43 = vadd.f32 %v4846_v50, %v2192_v61  ;;  %v4854_v25 = vpop.f32.mrb[52].mxu1  ;;  %v2525_v56 = vpop.f32.mrb[53].mxu0  ;;  %v2899_v50 = vrot.slane (!%p4196_p10), %v6173_v29, 1 }
 0x186   : > { %v5050_v17 = vadd.f32 %v4854_v25, %v2200_v23  ;;  %v2555_v63 = vpop.f32.mrb[53].mxu1  ;;  %v4847_v59 = vpop.f32.mrb[54].mxu0  ;;  %v5248_v23 = vld [vmem:[%s6690_s3 + $0x60] sm:$0xff] (!%p4196_p10)  }
 0x187   : > { %2614 = vst [vmem:[#allocation2] sm:$0xff] %v2600_v43  ;;  %v5053_v28 = vadd.f32 %v2555_v63, %v2198_v24  ;;  %v2601_v6 = vadd.f32 %v4847_v59, %v2193_v0  ;;  %v4855_v58 = vpop.f32.mrb[54].mxu1  ;;  %v2527_v53 = vpop.f32.mrb[55].mxu0  ;;  %v6187_v24 = vld [vmem:[%s5483_s16 + $0x8] ss:$0 sps:$4 sm:$0x11] (!%p4196_p10)  }
 0x188   : > { %2622 = vst [vmem:[#allocation2 + $0x40] sm:$0xff] %v5050_v17  ;;  %v5056_v36 = vadd.f32 %v4855_v58, %v2201_v9  ;;  %v2558_v48 = vpop.f32.mrb[55].mxu1  ;;  %v5259_v9 = vld [vmem:[%s6690_s3 + $0x20] sm:$0xff] (!%p4196_p10)   ;;  %v2782_v2 = vshll.u32 (!%p4196_p10), %v6187_v24, 16  ;;  %v2900_v43 = vrot.slane (!%p4196_p10), %v6187_v24, 1 }
 0x189   : > { %2620 = vst [vmem:[#allocation2 + $0x30] sm:$0xff] %v5053_v28  ;;  %2615 = vst [vmem:[#allocation2 + $0x8] sm:$0xff] %v2601_v6  ;;  %v5059_v52 = vadd.f32 %v2558_v48, %v2199_v10  ;;  %v5252_v10 = vld [vmem:[%s6690_s3 + $0x70] sm:$0xff] (!%p4196_p10)  }
 0x18a   : > { %2623 = vst [vmem:[#allocation2 + $0x48] sm:$0xff] %v5056_v36  ;;  %v2784_v18 = vrot.slane (!%p4196_p10), %v2782_v2, 1  ;;  %v2901_v25 = vsel (!%p4196_p10), %vm2898_vm8, %v2899_v50, %v2900_v43 }
 0x18b   : > { %2621 = vst [vmem:[#allocation2 + $0x38] sm:$0xff] %v5059_v52 }
 0x18c   : > { %v4850_v46 = vpop.f32.mrb[56].mxu0  ;;  %v2785_v54 = vsel (!%p4196_p10), %vm2773_vm7, %v2780_v57, %v2784_v18 }
 0x18d   : > { %v5035_v37 = vadd.f32 %v4850_v46, %v2400_v35  ;;  %v4858_v61 = vpop.f32.mrb[56].mxu1  ;;  %v2539_v41 = vpop.f32.mrb[57].mxu0  ;;  %2631 = sbr.rel (%p4196_p10) target bundleno = 679 (0x2a7), region = 48 }
 0x18e   : > { %v5062_v39 = vadd.f32 %v4858_v61, %v2204_v62  ;;  %v5039_v5 = vadd.f32 %v2539_v41, %v2398_v49  ;;  %v2571_v45 = vpop.f32.mrb[57].mxu1  ;;  %v4851_v22 = vpop.f32.mrb[58].mxu0  ;;  %v5244_v49 = vld [vmem:[%s6690_s3 + $0x40] sm:$0xff] (!%p4196_p10)   ;;  %v5263_v62 = vld [vmem:[%s6690_s3 + $0x30] sm:$0xff] (!%p4196_p10)  }
 0x18f   : > { %2618 = vst [vmem:[#allocation2 + $0x20] sm:$0xff] %v5035_v37  ;;  %v5065_v0 = vadd.f32 %v2571_v45, %v2202_v26  ;;  %v5043_v13 = vadd.f32 %v4851_v22, %v6123_v11  ;;  %v4859_v20 = vpop.f32.mrb[58].mxu1  ;;  %v2542_v51 = vpop.f32.mrb[59].mxu0  ;;  %4881 = vmatpush3.bf16.msra.mxu0 (!%p4196_p10), %v5244_v49  ;;  %v5245_v11 = vld [vmem:[%s6690_s3 + $0x48] sm:$0xff] (!%p4196_p10)   ;;  %v5262_v26 = vld [vmem:[%s6690_s3 + $0x90] sm:$0xff] (!%p4196_p10)   ;;  %v2635_v28 = vld [vmem:[#allocation2] sm:$0xff] (!%p4196_p10) }
 0x190   : > { %2626 = vst [vmem:[#allocation2 + $0x60] sm:$0xff] %v5062_v39  ;;  %2616 = vst [vmem:[#allocation2 + $0x10] sm:$0xff] %v5039_v5  ;;  %v5068_v42 = vadd.f32 %v4859_v20, %v2205_v40  ;;  %v5047_v4 = vadd.f32 %v2542_v51, %v6125_v15  ;;  %v2574_v16 = vpop.f32.mrb[59].mxu1  ;;  %4882 = vmatprep.subr.bf16.mxu0 (!%p4196_p10), %v5336_v47  ;;  %v5249_v15 = vld [vmem:[%s6690_s3] sm:$0xff] (!%p4196_p10)   ;;  %v5267_v40 = vld [vmem:[%s6690_s3 + $0xa8] sm:$0xff] (!%p4196_p10)  }
 0x191   : > { %2624 = vst [vmem:[#allocation2 + $0x50] sm:$0xff] %v5065_v0  ;;  %2619 = vst [vmem:[#allocation2 + $0x28] sm:$0xff] %v5043_v13  ;;  %v5071_v35 = vadd.f32 %v2574_v16, %v2203_v21  ;;  %4861 = vmatpush3.bf16.msra.mxu1 (!%p4196_p10), %v5249_v15  ;;  %v5269_v21 = vld [vmem:[%s6690_s3 + $0xb8] sm:$0xff] (!%p4196_p10)   ;;  %v2636_v58 = vld [vmem:[#allocation2 + $0x8] sm:$0xff] (!%p4196_p10) }
 0x192   : > { %2627 = vst [vmem:[#allocation2 + $0x68] sm:$0xff] %v5068_v42  ;;  %2617 = vst [vmem:[#allocation2 + $0x18] sm:$0xff] %v5047_v4  ;;  %4862 = vmatprep.subr.bf16.mxu1 (!%p4196_p10), %v5336_v47 }
 0x193   : > { %2625 = vst [vmem:[#allocation2 + $0x58] sm:$0xff] %v5071_v35  ;;  %4883 = vmatpush3.bf16.msra.mxu0 (!%p4196_p10), %v5245_v11 }
 0x194   : > { %4884 = vmatprep.subr.bf16.mxu0 %v5336_v47 }
 0x195   : > { %4863 = vmatpush3.bf16.msra.mxu1 %v5251_v34 }
 0x196   : > { %4864 = vmatprep.subr.bf16.mxu1 %v5336_v47 }
 0x197   : > { %4885 = vmatpush3.bf16.msra.mxu0 %v5246_v1 }
 0x198   : > { %4886 = vmatprep.subr.bf16.mxu0 %v5336_v47 }
 0x199   : > { %4865 = vmatpush3.bf16.msra.mxu1 %v5253_v12 }
 0x19a   : > { %4866 = vmatprep.subr.bf16.mxu1 %v5336_v47 }
 0x19b   : > { %4887 = vmatpush3.bf16.msra.mxu0 %v5247_v44 }
 0x19c   : > { %4888 = vmatprep.subr.bf16.mxu0 %v5336_v47 }
 0x19d   : > { %4867 = vmatpush3.bf16.msra.mxu1 %v5255_v60 }
 0x19e   : > { %4868 = vmatprep.subr.bf16.mxu1 %v5336_v47 }
 0x19f   : > { %4889 = vmatpush3.bf16.msra.mxu0 %v5248_v23 }
 0x1a0   : > { %4890 = vmatprep.subr.bf16.mxu0 %v5336_v47 }
 0x1a1   : > { %4869 = vmatpush3.bf16.msra.mxu1 %v5259_v9 }
 0x1a2   : > { %4870 = vmatprep.subr.bf16.mxu1 %v5336_v47 }
 0x1a3   : > { %4891 = vmatpush3.bf16.msra.mxu0 %v5250_v19 }
 0x1a4   : > { %4892 = vmatprep.subr.bf16.mxu0 %v5336_v47 }
 0x1a5   : > { %4871 = vmatpush3.bf16.msra.mxu1 %v5261_v30 }
 0x1a6   : > { %4872 = vmatprep.subr.bf16.mxu1 %v5336_v47 }
 0x1a7   : > { %4893 = vmatpush3.bf16.msra.mxu0 %v5252_v10 }
 0x1a8   : > { %4894 = vmatprep.subr.bf16.mxu0 %v5336_v47 }
 0x1a9   : > { %4873 = vmatpush3.bf16.msra.mxu1 %v5263_v62 }
 0x1aa   : > { %4874 = vmatprep.subr.bf16.mxu1 %v5336_v47 }
 0x1ab   : > { %4895 = vmatpush3.bf16.msra.mxu0 %v5254_v32 }
 0x1ac   : > { %4900 = vmatprep.subr.bf16.mxu0 %v5336_v47 }
 0x1ad   : > { %4875 = vmatpush3.bf16.msra.mxu1 %v5265_v14 }
 0x1ae   : > { %4897 = vmatmul.mubr.bf16.vlgmr.msra.gmra.mrb[0].mxu0 %v2785_v54 }
 0x1af   : > { %4901 = vmatpush3.bf16.msra.mxu0 %v5258_v33  ;;  %4916 = vmatprep.mubr.msk.bf16.mxu0 %vm5337_vm6, %v5336_v47 }
 0x1b0   : > { %4902 = vmatprep.subr.bf16.mxu0 %v5336_v47  ;;  %4877 = vmatmul.mubr.bf16.vlgmr.msra.gmra.mrb[0].mxu1 %v6173_v29 }
 0x1b3   : > { %4903 = vmatpush3.bf16.msra.mxu0 %v5260_v55 }
 0x1b4   : > { %4904 = vmatprep.subr.bf16.mxu0 %v5336_v47 }
 0x1b7   : > { %4905 = vmatpush3.bf16.msra.mxu0 %v5262_v26 }
 0x1b8   : > { %4906 = vmatprep.subr.bf16.mxu0 %v5336_v47 }
 0x1bb   : > { %4907 = vmatpush3.bf16.msra.mxu0 %v5264_v27 }
 0x1bc   : > { %4908 = vmatprep.subr.bf16.mxu0 %v5336_v47 }
 0x1bf   : > { %4909 = vmatpush3.bf16.msra.mxu0 %v5266_v38 }
 0x1c0   : > { %4910 = vmatprep.subr.bf16.mxu0 %v5336_v47 }
 0x1c3   : > { %4911 = vmatpush3.bf16.msra.mxu0 %v5267_v40 }
 0x1c4   : > { %4912 = vmatprep.subr.bf16.mxu0 %v5336_v47 }
 0x1c7   : > { %4913 = vmatpush3.bf16.msra.mxu0 %v5268_v8 }
 0x1c8   : > { %4914 = vmatprep.subr.bf16.mxu0 %v5336_v47 }
 0x1cb   : > { %4915 = vmatpush3.bf16.msra.mxu0 %v5269_v21 }
 0x1ce   : > { %4917 = vmatmul.mubr.bf16.vlgmr.msra.gmra.mrb[0].mxu0 %v2901_v25 }
 0x283   : > { %v2741_v56 = vpop.f32.mrb[0].mxu1 }
 0x284   : > { %v4878_v17 = vpop.f32.mrb[1].mxu1  ;;  %v2748_v6 = vadd.f32 %v2741_v56, %v2635_v28 }
 0x285   : > { %v2744_v63 = vpop.f32.mrb[2].mxu1 }
 0x286   : > { %v4879_v59 = vpop.f32.mrb[3].mxu1  ;;  %v2749_v36 = vadd.f32 %v2744_v63, %v2636_v58 }
 0x2a1   : > { %v2985_v53 = vpop.f32.mrb[0].mxu0 }
 0x2a2   : > { %v5095_v48 = vadd.f32 %v2985_v53, %v2748_v6  ;;  %v4918_v52 = vpop.f32.mrb[1].mxu0 }
 0x2a3   : > { %v2988_v46 = vpop.f32.mrb[2].mxu0 }
 0x2a4   : > { %2994 = vst [vmem:[#allocation2] sm:$0xff] %v5095_v48  ;;  %v5099_v37 = vadd.f32 %v2988_v46, %v2749_v36  ;;  %v4919_v61 = vpop.f32.mrb[3].mxu0 }
 0x2a6   : > { %2995 = vst [vmem:[#allocation2 + $0x8] sm:$0xff] %v5099_v37 }
 0x2a7 PF: > { %p4255_p11 = scmp.ge.s32.totalorder %s5318_s21, 1 }
 0x2a8   : > { %v5270_v41 = vld [vmem:[%s6690_s3 + $0x1c0] sm:$0xff] (!%p4255_p11)   ;;  %v5338_v39 = vmov (!%p4255_p11), 0.0   ;;  %v5271_v5 = vld [vmem:[%s6690_s3 + $0x1c8] sm:$0xff] (!%p4255_p11)   ;;  %vm5339_vm9 = vmmov (!%p4255_p11), 0   ;;  %v5272_v22 = vld [vmem:[%s6690_s3 + $0x1d0] sm:$0xff] (!%p4255_p11)   ;;  %vm3266_vm11 = vcmask (!%p4255_p11), 1046528  }
 0x2a9   : > { %2999 = sbr.rel (%p4255_p11) target bundleno = 962 (0x3c2), region = 52  ;;  %4940 = vmatprep.subr.bf16.mxu0 (!%p4255_p11), %v5338_v39  ;;  %4920 = vmatprep.subr.bf16.mxu1 (!%p4255_p11), %v5338_v39  ;;  %v5275_v45 = vld [vmem:[%s6690_s3 + $0x180] sm:$0xff] (!%p4255_p11)   ;;  %v5277_v0 = vld [vmem:[%s6690_s3 + $0x188] sm:$0xff] (!%p4255_p11)   ;;  %v5273_v13 = vld [vmem:[%s6690_s3 + $0x1d8] sm:$0xff] (!%p4255_p11)   ;;  %vm3141_vm10 = vsmask.f32 (!%p4255_p11), 7424 }
 0x2aa   : > { %4941 = vmatpush3.bf16.msra.mxu0 (!%p4255_p11), %v5270_v41  ;;  %4956 = vmatprep.mubr.msk.bf16.mxu0 (!%p4255_p11), %vm5339_vm9, %v5338_v39  ;;  %v5279_v20 = vld [vmem:[%s6690_s3 + $0x190] sm:$0xff] (!%p4255_p11)   ;;  %v6288_v51 = vld [vmem:[%s5515_s14] sm:$0xff] (!%p4255_p11)   ;;  %v5281_v4 = vld [vmem:[%s6690_s3 + $0x198] sm:$0xff] (!%p4255_p11)  }
 0x2ab   : > { %4942 = vmatprep.subr.bf16.mxu0 (!%p4255_p11), %v5338_v39  ;;  %4936 = vmatprep.mubr.msk.bf16.mxu1 (!%p4255_p11), %vm5339_vm9, %v5338_v39  ;;  %v5274_v42 = vld [vmem:[%s6690_s3 + $0x1e0] sm:$0xff] (!%p4255_p11)   ;;  %v5276_v16 = vld [vmem:[%s6690_s3 + $0x1e8] sm:$0xff] (!%p4255_p11)   ;;  %v3145_v49 = vshll.u32 (!%p4255_p11), %v6288_v51, 16  ;;  %v5278_v11 = vld [vmem:[%s6690_s3 + $0x1f0] sm:$0xff] (!%p4255_p11)   ;;  %v3143_v15 = vshrl.u32 (!%p4255_p11), %v6288_v51, 16  ;;  %v3267_v57 = vrot.slane (!%p4255_p11), %v6288_v51, 1 }
 0x2ac   : > { %4921 = vmatpush3.bf16.msra.mxu1 (!%p4255_p11), %v5275_v45  ;;  %v6302_v35 = vld [vmem:[%s5515_s14 + $0x8] ss:$0 sps:$4 sm:$0x11] (!%p4255_p11)   ;;  %v5285_v47 = vld [vmem:[%s6690_s3 + $0x1a0] sm:$0xff] (!%p4255_p11)   ;;  %v5280_v12 = vld [vmem:[%s6690_s3 + $0x1f8] sm:$0xff] (!%p4255_p11)  }
 0x2ad   : > { %4922 = vmatprep.subr.bf16.mxu1 (!%p4255_p11), %v5338_v39  ;;  %v3147_v1 = vrot.slane (!%p4255_p11), %v3145_v49, 1  ;;  %v3150_v34 = vshll.u32 (!%p4255_p11), %v6302_v35, 16  ;;  %v5287_v44 = vld [vmem:[%s6690_s3 + $0x1a8] sm:$0xff] (!%p4255_p11)   ;;  %v5289_v60 = vld [vmem:[%s6690_s3 + $0x1b0] sm:$0xff] (!%p4255_p11)   ;;  %v5284_v24 = vld [vmem:[%s6690_s3 + $0x200] sm:$0xff] (!%p4255_p11)   ;;  %v3268_v18 = vrot.slane (!%p4255_p11), %v6302_v35, 1 }
 0x2ae   : > { %4943 = vmatpush3.bf16.msra.mxu0 (!%p4255_p11), %v5271_v5  ;;  %v5291_v31 = vld [vmem:[%s6690_s3 + $0x1b8] sm:$0xff] (!%p4255_p11)   ;;  %v5286_v9 = vld [vmem:[%s6690_s3 + $0x208] sm:$0xff] (!%p4255_p11)   ;;  %v5288_v10 = vld [vmem:[%s6690_s3 + $0x210] sm:$0xff] (!%p4255_p11)  }
 0x2af   : > { %4944 = vmatprep.subr.bf16.mxu0 (!%p4255_p11), %v5338_v39  ;;  %v3148_v29 = vor.u32 (!%p4255_p11), %v3147_v1, %v3143_v15  ;;  %v3152_v23 = vrot.slane (!%p4255_p11), %v3150_v34, 1  ;;  %v5290_v3 = vld [vmem:[%s6690_s3 + $0x218] sm:$0xff] (!%p4255_p11)   ;;  %v5292_v7 = vld [vmem:[%s6690_s3 + $0x220] sm:$0xff] (!%p4255_p11)   ;;  %v5293_v2 = vld [vmem:[%s6690_s3 + $0x228] sm:$0xff] (!%p4255_p11)   ;;  %v3269_v62 = vsel (!%p4255_p11), %vm3266_vm11, %v3267_v57, %v3268_v18 }
 0x2b0   : > { %4923 = vmatpush3.bf16.msra.mxu1 %v5277_v0  ;;  %v5294_v30 = vld [vmem:[%s6690_s3 + $0x230] sm:$0xff]   ;;  %v5295_v32 = vld [vmem:[%s6690_s3 + $0x238] sm:$0xff]  }
 0x2b1   : > { %4924 = vmatprep.subr.bf16.mxu1 %v5338_v39  ;;  %v3153_v19 = vsel %vm3141_vm10, %v3148_v29, %v3152_v23  ;;  %v3003_v26 = vld [vmem:[#allocation2 + $0x70] sm:$0xff]  ;;  %v3004_v38 = vld [vmem:[#allocation2 + $0x78] sm:$0xff] }
 0x2b2   : > { %4945 = vmatpush3.bf16.msra.mxu0 %v5272_v22 }
 0x2b3   : > { %4946 = vmatprep.subr.bf16.mxu0 %v5338_v39 }
 0x2b4   : > { %4925 = vmatpush3.bf16.msra.mxu1 %v5279_v20 }
 0x2b5   : > { %4926 = vmatprep.subr.bf16.mxu1 %v5338_v39 }
 0x2b6   : > { %4947 = vmatpush3.bf16.msra.mxu0 %v5273_v13 }
 0x2b7   : > { %4948 = vmatprep.subr.bf16.mxu0 %v5338_v39 }
 0x2b8   : > { %4927 = vmatpush3.bf16.msra.mxu1 %v5281_v4 }
 0x2b9   : > { %4928 = vmatprep.subr.bf16.mxu1 %v5338_v39 }
 0x2ba   : > { %4949 = vmatpush3.bf16.msra.mxu0 %v5274_v42 }
 0x2bb   : > { %4950 = vmatprep.subr.bf16.mxu0 %v5338_v39 }
 0x2bc   : > { %4929 = vmatpush3.bf16.msra.mxu1 %v5285_v47 }
 0x2bd   : > { %4930 = vmatprep.subr.bf16.mxu1 %v5338_v39 }
 0x2be   : > { %4951 = vmatpush3.bf16.msra.mxu0 %v5276_v16 }
 0x2bf   : > { %4952 = vmatprep.subr.bf16.mxu0 %v5338_v39 }
 0x2c0   : > { %4931 = vmatpush3.bf16.msra.mxu1 %v5287_v44 }
 0x2c1   : > { %4932 = vmatprep.subr.bf16.mxu1 %v5338_v39 }
 0x2c2   : > { %4953 = vmatpush3.bf16.msra.mxu0 %v5278_v11 }
 0x2c3   : > { %4954 = vmatprep.subr.bf16.mxu0 %v5338_v39 }
 0x2c4   : > { %4933 = vmatpush3.bf16.msra.mxu1 %v5289_v60 }
 0x2c5   : > { %4934 = vmatprep.subr.bf16.mxu1 %v5338_v39 }
 0x2c6   : > { %4955 = vmatpush3.bf16.msra.mxu0 %v5280_v12 }
 0x2c7   : > { %4960 = vmatprep.subr.bf16.mxu0 %v5338_v39 }
 0x2c8   : > { %4935 = vmatpush3.bf16.msra.mxu1 %v5291_v31 }
 0x2c9   : > { %4957 = vmatmul.mubr.bf16.vlgmr.msra.gmra.mrb[0].mxu0 %v3153_v19 }
 0x2ca   : > { %4961 = vmatpush3.bf16.msra.mxu0 %v5284_v24  ;;  %4976 = vmatprep.mubr.msk.bf16.mxu0 %vm5339_vm9, %v5338_v39 }
 0x2cb   : > { %4962 = vmatprep.subr.bf16.mxu0 %v5338_v39  ;;  %4937 = vmatmul.mubr.bf16.vlgmr.msra.gmra.mrb[0].mxu1 %v6288_v51 }
 0x2ce   : > { %4963 = vmatpush3.bf16.msra.mxu0 %v5286_v9 }
 0x2cf   : > { %4964 = vmatprep.subr.bf16.mxu0 %v5338_v39 }
 0x2d2   : > { %4965 = vmatpush3.bf16.msra.mxu0 %v5288_v10 }
 0x2d3   : > { %4966 = vmatprep.subr.bf16.mxu0 %v5338_v39 }
 0x2d6   : > { %4967 = vmatpush3.bf16.msra.mxu0 %v5290_v3 }
 0x2d7   : > { %4968 = vmatprep.subr.bf16.mxu0 %v5338_v39 }
 0x2da   : > { %4969 = vmatpush3.bf16.msra.mxu0 %v5292_v7 }
 0x2db   : > { %4970 = vmatprep.subr.bf16.mxu0 %v5338_v39 }
 0x2de   : > { %4971 = vmatpush3.bf16.msra.mxu0 %v5293_v2 }
 0x2df   : > { %4972 = vmatprep.subr.bf16.mxu0 %v5338_v39 }
 0x2e2   : > { %4973 = vmatpush3.bf16.msra.mxu0 %v5294_v30 }
 0x2e3   : > { %4974 = vmatprep.subr.bf16.mxu0 %v5338_v39 }
 0x2e6   : > { %4975 = vmatpush3.bf16.msra.mxu0 %v5295_v32 }
 0x2e9   : > { %4977 = vmatmul.mubr.bf16.vlgmr.msra.gmra.mrb[0].mxu0 %v3269_v62 }
 0x39e   : > { %v3109_v54 = vpop.f32.mrb[0].mxu1 }
 0x39f   : > { %v4938_v33 = vpop.f32.mrb[1].mxu1  ;;  %v3116_v27 = vadd.f32 %v3109_v54, %v3003_v26 }
 0x3a0   : > { %v3112_v14 = vpop.f32.mrb[2].mxu1 }
 0x3a1   : > { %v4939_v55 = vpop.f32.mrb[3].mxu1  ;;  %v3117_v8 = vadd.f32 %v3112_v14, %v3004_v38 }
 0x3bc   : > { %v3353_v40 = vpop.f32.mrb[0].mxu0 }
 0x3bd   : > { %v5107_v21 = vadd.f32 %v3353_v40, %v3116_v27  ;;  %v4978_v50 = vpop.f32.mrb[1].mxu0 }
 0x3be   : > { %v3356_v43 = vpop.f32.mrb[2].mxu0 }
 0x3bf   : > { %3362 = vst [vmem:[#allocation2 + $0x70] sm:$0xff] %v5107_v21  ;;  %v5111_v25 = vadd.f32 %v3356_v43, %v3117_v8  ;;  %v4979_v56 = vpop.f32.mrb[3].mxu0 }
 0x3c1   : > { %3363 = vst [vmem:[#allocation2 + $0x78] sm:$0xff] %v5111_v25 }
 0x3c2 PF: > { %v3364_v17 = vld [vmem:[#allocation2] sm:$0xff]  ;;  %v3365_v6 = vld [vmem:[#allocation2 + $0x8] sm:$0xff]  ;;  %v3366_v36 = vld [vmem:[#allocation2 + $0x10] sm:$0xff]  ;;  %vm3522_vm12 = vsmask.f32 256  ;;  %vm3685_vm13 = vcmask 1043456  }
 0x3c3   : > { %v6372_v63 = vld [vmem:[%s6691_s4] ss:$0 sm:$0xff]  ;;  %v3367_v52 = vld [vmem:[#allocation2 + $0x18] sm:$0xff]  ;;  %vm3686_vm15 = vsmask.f32 7938  ;;  %vm3692_vm0 = vcmask 1040384  }
 0x3c4   : > { %v6377_v59 = vld [vmem:[%s6692_s5] ss:$0 sm:$0xff]  ;;  %v3387_v28 = vmul.f32 %v6372_v63, %v3364_v17  ;;  %v3388_v53 = vmul.f32 %v6372_v63, %v3365_v6  ;;  %v3389_v48 = vmul.f32 %v6372_v63, %v3366_v36  ;;  %v3390_v61 = vmul.f32 %v6372_v63, %v3367_v52  ;;  %v3369_v45 = vld [vmem:[#allocation2 + $0x28] sm:$0xff]  ;;  %v3370_v1 = vld [vmem:[#allocation2 + $0x30] sm:$0xff] }
 0x3c5   : > { %v3368_v41 = vld [vmem:[#allocation2 + $0x20] sm:$0xff]  ;;  %v3392_v35 = vmul.f32 %v6372_v63, %v3369_v45  ;;  %vm6400_vm5 = vmand %vm3685_vm13, %vm3686_vm15  ;;  %v3393_v7 = vmul.f32 %v6372_v63, %v3370_v1  ;;  %v3694_v32 = vld [vmem:[%s5452_s19 + $0x8] sm:$0x1] }
 0x3c6   : > { %v3410_v58 = vadd.f32 %v6377_v59, %v3387_v28  ;;  %v3411_v37 = vadd.f32 %v6377_v59, %v3388_v53  ;;  %v3412_v39 = vadd.f32 %v6377_v59, %v3389_v48  ;;  %v3391_v5 = vmul.f32 %v6372_v63, %v3368_v41  ;;  %v3688_v31 = vld [vmem:[%s5452_s19] sm:$0xf]  ;;  %vm6413_vm6 = vmand %vm3692_vm0, %vm3522_vm12  ;;  %v3697_v33 = vld [vmem:[%s5452_s19 + $0xc] sm:$0xf] }
 0x3c7   : > { %v3413_v13 = vadd.f32 %v6377_v59, %v3390_v61  ;;  %v3415_v19 = vadd.f32 %v6377_v59, %v3392_v35  ;;  %v3416_v55 = vadd.f32 %v6377_v59, %v3393_v7  ;;  %v3371_v8 = vld [vmem:[#allocation2 + $0x38] sm:$0xff]  ;;  %v3372_v21 = vld [vmem:[#allocation2 + $0x40] sm:$0xff]  ;;  %v3701_v43 = vld [vmem:[%s5452_s19 + $0x14] sm:$0x1] }
 0x3c8   : > { %vm3426_vm14 = vcmp.ge.f32.partialorder %v3410_v58, 0.0  ;;  %v3442_v46 = vmul.f32 0.01, %v3410_v58  ;;  %vm3427_vm1 = vcmp.ge.f32.partialorder %v3411_v37, 0.0  ;;  %v3443_v0 = vmul.f32 0.01, %v3411_v37 }
 0x3c9   : > { %vm3428_vm2 = vcmp.ge.f32.partialorder %v3412_v39, 0.0  ;;  %v3444_v51 = vmul.f32 0.01, %v3412_v39  ;;  %v3414_v42 = vadd.f32 %v6377_v59, %v3391_v5  ;;  %vm3429_vm3 = vcmp.ge.f32.partialorder %v3413_v13, 0.0  ;;  %v3373_v17 = vld [vmem:[#allocation2 + $0x48] sm:$0xff]  ;;  %v3374_v36 = vld [vmem:[#allocation2 + $0x50] sm:$0xff] }
 0x3ca   : > { %v3458_v22 = vsel %vm3426_vm14, %v3410_v58, %v3442_v46  ;;  %v3459_v4 = vsel %vm3427_vm1, %v3411_v37, %v3443_v0  ;;  %v3445_v16 = vmul.f32 0.01, %v3413_v13  ;;  %vm3431_vm7 = vcmp.ge.f32.partialorder %v3415_v19, 0.0  ;;  %v3704_v52 = vld [vmem:[%s5452_s19 + $0x18] sm:$0xf] }
 0x3cb   : > { %v4358_v20 = vpack.c.bf16 %v3458_v22, %v3458_v22  ;;  %v6390_v11 = vpack.c.bf16 %v3459_v4, %v3459_v4  ;;  %v3460_v15 = vsel %vm3428_vm2, %v3412_v39, %v3444_v51  ;;  %vm3430_vm4 = vcmp.ge.f32.partialorder %v3414_v42, 0.0  ;;  %v3708_v4 = vld [vmem:[%s5452_s19 + $0x20] sm:$0x1] }
 0x3cc   : > { %v4360_v34 = vpack.c.bf16 %v3460_v15, %v3460_v15  ;;  %v3461_v44 = vsel %vm3429_vm3, %v3413_v13, %v3445_v16  ;;  %v3446_v12 = vmul.f32 0.01, %v3414_v42  ;;  %v3447_v14 = vmul.f32 0.01, %v3415_v19 }
 0x3cd   : > { %v3526_v49 = vshrl.u32 %v4358_v20, 16  ;;  %v3529_v47 = vshll.u32 %v4358_v20, 16  ;;  %v3534_v23 = vshrl.u32 %v6390_v11, 16  ;;  %v6395_v60 = vpack.c.bf16 %v3461_v44, %v3461_v44  ;;  %v3375_v44 = vld [vmem:[#allocation2 + $0x58] sm:$0xff] }
 0x3ce   : > { %v3543_v9 = vshrl.u32 %v4360_v34, 16  ;;  %v3546_v10 = vshll.u32 %v4360_v34, 16  ;;  %v3462_v3 = vsel %vm3430_vm4, %v3414_v42, %v3446_v12  ;;  %v3463_v56 = vsel %vm3431_vm7, %v3415_v19, %v3447_v14 }
 0x3cf   : > { %v6392_v29 = vrot.slane %v3526_v49, 7  ;;  %v6407_v30 = vrot.slane %v3534_v23, 7  ;;  %v3551_v57 = vshrl.u32 %v6395_v60, 16  ;;  %v4362_v18 = vpack.c.bf16 %v3462_v3, %v3462_v3 }
 0x3d0   : > { %v6417_v54 = vrot.slane %v3543_v9, 7  ;;  %vm3432_vm8 = vcmp.ge.f32.partialorder %v3416_v55, 0.0  ;;  %v6434_v53 = vpack.c.bf16 %v3463_v56, %v3463_v56  ;;  %v3448_v46 = vmul.f32 0.01, %v3416_v55  ;;  %v3715_v56 = vld [vmem:[%s5452_s19 + $0x2c] sm:$0x1] }
 0x3d1   : > { %v3531_v2 = vor.u32 %v3529_v47, %v6392_v29  ;;  %v3541_v27 = vrot.slane %v6407_v30, 4  ;;  %v6424_v38 = vrot.slane %v3551_v57, 7  ;;  %v3560_v40 = vshrl.u32 %v4362_v18, 16 }
 0x3d2   : > { %v3548_v50 = vor.u32 %v3546_v10, %v6417_v54  ;;  %v3563_v25 = vshll.u32 %v4362_v18, 16  ;;  %v3394_v37 = vmul.f32 %v6372_v63, %v3371_v8  ;;  %v3395_v61 = vmul.f32 %v6372_v63, %v3372_v21 }
 0x3d3   : > { %v3689_v26 = vsel %vm6400_vm5, %v3531_v2, %v3688_v31  ;;  %v3695_v28 = vsel %vm6413_vm6, %v3541_v27, %v3694_v32  ;;  %v3558_v6 = vrot.slane %v6424_v38, 4  ;;  %v6432_v58 = vrot.slane %v3560_v40, 7  ;;  %v3376_v2 = vld [vmem:[#allocation2 + $0x60] sm:$0xff] }
 0x3d4   : > { %3690 = vst [vmem:[%s5452_s19] sm:$0xf] %v3689_v26  ;;  %3696 = vst [vmem:[%s5452_s19 + $0x8] sm:$0x1] %v3695_v28  ;;  %v3698_v48 = vsel %vm6400_vm5, %v3548_v50, %v3697_v33  ;;  %v3568_v5 = vshrl.u32 %v6434_v53, 16  ;;  %v3396_v45 = vmul.f32 %v6372_v63, %v3373_v17  ;;  %v3464_v22 = vsel %vm3432_vm8, %v3416_v55, %v3448_v46  ;;  %v3711_v32 = vld [vmem:[%s5452_s19 + $0x24] sm:$0xf] }
 0x3d5   : > { %3699 = vst [vmem:[%s5452_s19 + $0xc] sm:$0xf] %v3698_v48  ;;  %v3702_v41 = vsel %vm6413_vm6, %v3558_v6, %v3701_v43  ;;  %v3565_v39 = vor.u32 %v3563_v25, %v6432_v58  ;;  %v3417_v0 = vadd.f32 %v6377_v59, %v3394_v37  ;;  %v3418_v13 = vadd.f32 %v6377_v59, %v3395_v61  ;;  %v3718_v6 = vld [vmem:[%s5452_s19 + $0x30] sm:$0xf] }
 0x3d6   : > { %3703 = vst [vmem:[%s5452_s19 + $0x14] sm:$0x1] %v3702_v41  ;;  %v3397_v20 = vmul.f32 %v6372_v63, %v3374_v36  ;;  %v6455_v42 = vrot.slane %v3568_v5, 7  ;;  %v4364_v16 = vpack.c.bf16 %v3464_v22, %v3464_v22  ;;  %v3419_v35 = vadd.f32 %v6377_v59, %v3396_v45  ;;  %v3378_v5 = vld [vmem:[#allocation2 + $0x70] sm:$0xff] }
 0x3d7   : > { %v3705_v51 = vsel %vm6400_vm5, %v3565_v39, %v3704_v52  ;;  %vm3433_vm9 = vcmp.ge.f32.partialorder %v3417_v0, 0.0  ;;  %v3449_v49 = vmul.f32 0.01, %v3417_v0  ;;  %vm3434_vm10 = vcmp.ge.f32.partialorder %v3418_v13, 0.0  ;;  %v3377_v39 = vld [vmem:[#allocation2 + $0x68] sm:$0xff] }
 0x3d8   : > { %3706 = vst [vmem:[%s5452_s19 + $0x18] sm:$0xf] %v3705_v51  ;;  %v3450_v47 = vmul.f32 0.01, %v3418_v13  ;;  %v3575_v15 = vrot.slane %v6455_v42, 4  ;;  %v3577_v1 = vshrl.u32 %v4364_v16, 16  ;;  %v3420_v31 = vadd.f32 %v6377_v59, %v3397_v20 }
 0x3d9   : > { %v3580_v34 = vshll.u32 %v4364_v16, 16  ;;  %vm3435_vm11 = vcmp.ge.f32.partialorder %v3419_v35, 0.0  ;;  %v3465_v12 = vsel %vm3433_vm9, %v3417_v0, %v3449_v49  ;;  %v3451_v19 = vmul.f32 0.01, %v3419_v35 }
 0x3da   : > { %v3466_v23 = vsel %vm3434_vm10, %v3418_v13, %v3450_v47  ;;  %v3709_v9 = vsel %vm6413_vm6, %v3575_v15, %v3708_v4  ;;  %v6464_v10 = vrot.slane %v3577_v1, 7  ;;  %v6466_v3 = vpack.c.bf16 %v3465_v12, %v3465_v12  ;;  %v3379_v13 = vld [vmem:[#allocation2 + $0x78] sm:$0xff] }
 0x3db   : > { %v4366_v7 = vpack.c.bf16 %v3466_v23, %v3466_v23  ;;  %3710 = vst [vmem:[%s5452_s19 + $0x20] sm:$0x1] %v3709_v9  ;;  %v3467_v57 = vsel %vm3435_vm11, %v3419_v35, %v3451_v19  ;;  %vm3436_vm13 = vcmp.ge.f32.partialorder %v3420_v31, 0.0  ;;  %v3452_v18 = vmul.f32 0.01, %v3420_v31 }
 0x3dc   : > { %v3398_v33 = vmul.f32 %v6372_v63, %v3375_v44  ;;  %v3582_v14 = vor.u32 %v3580_v34, %v6464_v10  ;;  %v3585_v55 = vshrl.u32 %v6466_v3, 16  ;;  %v6473_v40 = vpack.c.bf16 %v3467_v57, %v3467_v57  ;;  %v3722_v4 = vld [vmem:[%s5452_s19 + $0x38] sm:$0x1]  ;;  %v3725_v47 = vld [vmem:[%s5452_s19 + $0x3c] sm:$0xf] }
 0x3dd   : > { %v3594_v26 = vshrl.u32 %v4366_v7, 16  ;;  %v3597_v27 = vshll.u32 %v4366_v7, 16  ;;  %v3468_v8 = vsel %vm3436_vm13, %v3420_v31, %v3452_v18  ;;  %v3399_v50 = vmul.f32 %v6372_v63, %v3376_v2  ;;  %v3729_v18 = vld [vmem:[%s5452_s19 + $0x44] sm:$0x1] }
 0x3de   : > { %v3421_v21 = vadd.f32 %v6377_v59, %v3398_v33  ;;  %v3712_v43 = vsel %vm6400_vm5, %v3582_v14, %v3711_v32  ;;  %v6479_v25 = vrot.slane %v3585_v55, 7  ;;  %v4368_v28 = vpack.c.bf16 %v3468_v8, %v3468_v8 }
 0x3df   : > { %v6482_v17 = vrot.slane %v3594_v26, 7  ;;  %3713 = vst [vmem:[%s5452_s19 + $0x24] sm:$0xf] %v3712_v43  ;;  %v3602_v36 = vshrl.u32 %v6473_v40, 16  ;;  %v3422_v52 = vadd.f32 %v6377_v59, %v3399_v50  ;;  %vm3523_vm1 = vsmask.f32 4368 }
 0x3e0   : > { %vm3437_vm14 = vcmp.ge.f32.partialorder %v3421_v21, 0.0  ;;  %v3453_v48 = vmul.f32 0.01, %v3421_v21  ;;  %v3592_v46 = vrot.slane %v6479_v25, 4  ;;  %v3611_v61 = vshrl.u32 %v4368_v28, 16  ;;  %vm6537_vm7 = vmor %vm3522_vm12, %vm3523_vm1 }
 0x3e1   : > { %v3599_v37 = vor.u32 %v3597_v27, %v6482_v17  ;;  %v3614_v41 = vshll.u32 %v4368_v28, 16  ;;  %v6490_v45 = vrot.slane %v3602_v36, 7  ;;  %vm3438_vm2 = vcmp.ge.f32.partialorder %v3422_v52, 0.0  ;;  %vm6597_vm12 = vmand %vm3692_vm0, %vm3686_vm15 }
 0x3e2   : > { %v3469_v22 = vsel %vm3437_vm14, %v3421_v21, %v3453_v48  ;;  %v3454_v0 = vmul.f32 0.01, %v3422_v52  ;;  %v3716_v20 = vsel %vm6413_vm6, %v3592_v46, %v3715_v56  ;;  %v6497_v16 = vrot.slane %v3611_v61, 7  ;;  %v3732_v21 = vld [vmem:[%s5452_s19 + $0x48] sm:$0xf] }
 0x3e3   : > { %v3719_v51 = vsel %vm6400_vm5, %v3599_v37, %v3718_v6  ;;  %v6499_v35 = vpack.c.bf16 %v3469_v22, %v3469_v22  ;;  %3717 = vst [vmem:[%s5452_s19 + $0x2c] sm:$0x1] %v3716_v20  ;;  %v3609_v49 = vrot.slane %v6490_v45, 4  ;;  %v3400_v1 = vmul.f32 %v6372_v63, %v3377_v39 }
 0x3e4   : > { %3720 = vst [vmem:[%s5452_s19 + $0x30] sm:$0xf] %v3719_v51  ;;  %v3470_v15 = vsel %vm3438_vm2, %v3422_v52, %v3454_v0  ;;  %v3401_v34 = vmul.f32 %v6372_v63, %v3378_v5  ;;  %v3616_v44 = vor.u32 %v3614_v41, %v6497_v16  ;;  %v3402_v19 = vmul.f32 %v6372_v63, %v3379_v13 }
 0x3e5   : > { %v3619_v12 = vshrl.u32 %v6499_v35, 16  ;;  %v4370_v23 = vpack.c.bf16 %v3470_v15, %v3470_v15  ;;  %v3723_v31 = vsel %vm6413_vm6, %v3609_v49, %v3722_v4  ;;  %v3423_v9 = vadd.f32 %v6377_v59, %v3400_v1  ;;  %v3739_v4 = vld [vmem:[%s5452_s19 + $0x54] sm:$0xf] }
 0x3e6   : > { %v3424_v7 = vadd.f32 %v6377_v59, %v3401_v34  ;;  %v3532_v2 = vrot.slane %v6392_v29, 4  ;;  %3724 = vst [vmem:[%s5452_s19 + $0x38] sm:$0x1] %v3723_v31  ;;  %v3726_v32 = vsel %vm6400_vm5, %v3616_v44, %v3725_v47  ;;  %v3425_v29 = vadd.f32 %v6377_v59, %v3402_v19  ;;  %v3749_v19 = vld [vmem:[%s5452_s19 + $0xc] sm:$0x1] }
 0x3e7   : > { %v6518_v57 = vrot.slane %v3619_v12, 7  ;;  %v3628_v33 = vshrl.u32 %v4370_v23, 16  ;;  %v3631_v14 = vshll.u32 %v4370_v23, 16  ;;  %3727 = vst [vmem:[%s5452_s19 + $0x3c] sm:$0xf] %v3726_v32  ;;  %vm3439_vm3 = vcmp.ge.f32.partialorder %v3423_v9, 0.0 }
 0x3e8   : > { %v3455_v63 = vmul.f32 0.01, %v3423_v9  ;;  %vm3440_vm4 = vcmp.ge.f32.partialorder %v3424_v7, 0.0  ;;  %v3456_v55 = vmul.f32 0.01, %v3424_v7  ;;  %v3537_v8 = vshll.u32 %v6390_v11, 16 }
 0x3e9   : > { %v3626_v26 = vrot.slane %v6518_v57, 4  ;;  %v6523_v27 = vrot.slane %v3628_v33, 7  ;;  %v3549_v56 = vrot.slane %v6417_v54, 4  ;;  %v3554_v28 = vshll.u32 %v6395_v60, 16  ;;  %v3743_v12 = vld [vmem:[%s5452_s19 + $0x5c] sm:$0x1] }
 0x3ea   : > { %v3471_v50 = vsel %vm3439_vm3, %v3423_v9, %v3455_v63  ;;  %v3472_v43 = vsel %vm3440_vm4, %v3424_v7, %v3456_v55  ;;  %vm3441_vm8 = vcmp.ge.f32.partialorder %v3425_v29, 0.0  ;;  %v3457_v11 = vmul.f32 0.01, %v3425_v29  ;;  %v3746_v23 = vld [vmem:[%s5452_s19] sm:$0x1] }
 0x3eb   : > { %v3730_v6 = vsel %vm6413_vm6, %v3626_v26, %v3729_v18  ;;  %v3633_v36 = vor.u32 %v3631_v14, %v6523_v27  ;;  %v6533_v48 = vpack.c.bf16 %v3471_v50, %v3471_v50  ;;  %v4372_v52 = vpack.c.bf16 %v3472_v43, %v3472_v43  ;;  %v3758_v18 = vld [vmem:[%s5452_s19 + $0x30] sm:$0x1]  ;;  %v3774_v14 = vld [vmem:[%s5452_s19 + $0x14] sm:$0x1]  ;;  %v3777_v63 = vld [vmem:[%s5452_s19 + $0x20] sm:$0x1] }
 0x3ec   : > { %3731 = vst [vmem:[%s5452_s19 + $0x44] sm:$0x1] %v3730_v6  ;;  %v3539_v60 = vor.u32 %v3537_v8, %v6407_v30  ;;  %v3556_v54 = vor.u32 %v3554_v28, %v6424_v38  ;;  %v3473_v39 = vsel %vm3441_vm8, %v3425_v29, %v3457_v11  ;;  %v3566_v30 = vrot.slane %v6432_v58, 4  ;;  %v3736_v38 = vld [vmem:[%s5452_s19 + $0x50] sm:$0x1] }
 0x3ed   : > { %v3733_v46 = vsel %vm6400_vm5, %v3633_v36, %v3732_v21  ;;  %v3636_v37 = vshrl.u32 %v6533_v48, 16  ;;  %v3645_v61 = vshrl.u32 %v4372_v52, 16  ;;  %v3648_v41 = vshll.u32 %v4372_v52, 16  ;;  %v3780_v28 = vld [vmem:[%s5452_s19 + $0x2c] sm:$0x1] }
 0x3ee   : > { %3734 = vst [vmem:[%s5452_s19 + $0x48] sm:$0xf] %v3733_v46  ;;  %v3540_v5 = vsel %vm6537_vm7, %v3532_v2, %v3539_v60  ;;  %v3557_v22 = vsel %vm6537_vm7, %v3549_v56, %v3556_v54  ;;  %v4373_v20 = vpack.c.bf16 %v3473_v39, %v3473_v39  ;;  %v3571_v51 = vshll.u32 %v6434_v53, 16  ;;  %v3761_v33 = vld [vmem:[%s5452_s19 + $0x3c] sm:$0x1] }
 0x3ef   : > { %v3638_v0 = vrot.slane %v3636_v37, 7  ;;  %v6554_v13 = vrot.slane %v3645_v61, 7  ;;  %3691 = vst [vmem:[%s5452_s19 + $0x4] sm:$0xf] %v3540_v5  ;;  %3700 = vst [vmem:[%s5452_s19 + $0x10] sm:$0xf] %v3557_v22 }
 0x3f0   : > { %v3583_v49 = vrot.slane %v6464_v10, 4  ;;  %v3588_v47 = vshll.u32 %v6466_v3, 16  ;;  %v3600_v15 = vrot.slane %v6482_v17, 4  ;;  %v3605_v58 = vshll.u32 %v6473_v40, 16  ;;  %v3783_v11 = vld [vmem:[%s5452_s19 + $0x38] sm:$0x1] }
 0x3f1   : > { %v3643_v1 = vrot.slane %v3638_v0, 4  ;;  %v3650_v34 = vor.u32 %v3648_v41, %v6554_v13  ;;  %v3653_v44 = vshrl.u32 %v4373_v20, 16  ;;  %v3573_v53 = vor.u32 %v3571_v51, %v6455_v42 }
 0x3f2   : > { %v3590_v10 = vor.u32 %v3588_v47, %v6479_v25  ;;  %v3607_v3 = vor.u32 %v3605_v58, %v6490_v45  ;;  %v3617_v17 = vrot.slane %v6497_v16, 4  ;;  %v3622_v40 = vshll.u32 %v6499_v35, 16  ;;  %v3752_v45 = vld [vmem:[%s5452_s19 + $0x18] sm:$0x1]  ;;  %v3755_v16 = vld [vmem:[%s5452_s19 + $0x24] sm:$0x1] }
 0x3f3   : > { %v3737_v31 = vsel %vm6413_vm6, %v3643_v1, %v3736_v38  ;;  %v3740_v42 = vsel %vm6400_vm5, %v3650_v34, %v3739_v4  ;;  %v3655_v9 = vrot.slane %v3653_v44, 7  ;;  %v3574_v25 = vsel %vm6537_vm7, %v3566_v30, %v3573_v53  ;;  %v3771_v35 = vld [vmem:[%s5452_s19 + $0x8] sm:$0x1]  ;;  %v3786_v60 = vld [vmem:[%s5452_s19 + $0x44] sm:$0x1] }
 0x3f4   : > { %3738 = vst [vmem:[%s5452_s19 + $0x50] sm:$0x1] %v3737_v31  ;;  %3741 = vst [vmem:[%s5452_s19 + $0x54] sm:$0xf] %v3740_v42  ;;  %v3591_v7 = vsel %vm6537_vm7, %v3583_v49, %v3590_v10  ;;  %v3608_v24 = vsel %vm6537_vm7, %v3600_v15, %v3607_v3  ;;  %v3624_v2 = vor.u32 %v3622_v40, %v6518_v57  ;;  %v3634_v32 = vrot.slane %v6523_v27, 4 }
 0x3f5   : > { %3707 = vst [vmem:[%s5452_s19 + $0x1c] sm:$0xf] %v3574_v25  ;;  %v3660_v26 = vrot.slane %v3655_v9, 4  ;;  %3714 = vst [vmem:[%s5452_s19 + $0x28] sm:$0xf] %v3591_v7  ;;  %v3639_v57 = vshll.u32 %v6533_v48, 16 }
 0x3f6   : > { %3721 = vst [vmem:[%s5452_s19 + $0x34] sm:$0xf] %v3608_v24  ;;  %v3651_v27 = vrot.slane %v6554_v13, 4  ;;  %v3656_v29 = vshll.u32 %v4373_v20, 16  ;;  %v3764_v8 = vld [vmem:[%s5452_s19 + $0x48] sm:$0x1]  ;;  %v3625_v21 = vsel %vm6537_vm7, %v3617_v17, %v3624_v2 }
 0x3f7   : > { %v3747_v50 = vsel %vm6413_vm6, 0, %v3746_v23  ;;  %v3750_v43 = vsel %vm6413_vm6, 0, %v3749_v19  ;;  %v3753_v56 = vsel %vm6413_vm6, 0, %v3752_v45  ;;  %v3744_v6 = vsel %vm6413_vm6, %v3660_v26, %v3743_v12  ;;  %3728 = vst [vmem:[%s5452_s19 + $0x40] sm:$0xf] %v3625_v21 }
 0x3f8   : > { %v3641_v36 = vor.u32 %v3639_v57, %v3638_v0  ;;  %v3658_v48 = vor.u32 %v3656_v29, %v3655_v9  ;;  %3748 = vst [vmem:[%s5452_s19] sm:$0x1] %v3747_v50  ;;  %3751 = vst [vmem:[%s5452_s19 + $0xc] sm:$0x1] %v3750_v43  ;;  %v3756_v52 = vsel %vm6413_vm6, 0, %v3755_v16  ;;  %v3759_v54 = vsel %vm6413_vm6, 0, %v3758_v18 }
 0x3f9   : > { %3754 = vst [vmem:[%s5452_s19 + $0x18] sm:$0x1] %v3753_v56  ;;  %3745 = vst [vmem:[%s5452_s19 + $0x5c] sm:$0x1] %v3744_v6  ;;  %v3762_v46 = vsel %vm6413_vm6, 0, %v3761_v33  ;;  %v3765_v37 = vsel %vm6413_vm6, 0, %v3764_v8 }
 0x3fa   : > { %3757 = vst [vmem:[%s5452_s19 + $0x24] sm:$0x1] %v3756_v52  ;;  %v3772_v61 = vsel %vm6597_vm12, 0, %v3771_v35  ;;  %v3642_v41 = vsel %vm6537_vm7, %v3634_v32, %v3641_v36  ;;  %v3659_v39 = vsel %vm6537_vm7, %v3651_v27, %v3658_v48  ;;  %3760 = vst [vmem:[%s5452_s19 + $0x30] sm:$0x1] %v3759_v54  ;;  %v3775_v5 = vsel %vm6597_vm12, 0, %v3774_v14 }
 0x3fb   : > { %3763 = vst [vmem:[%s5452_s19 + $0x3c] sm:$0x1] %v3762_v46  ;;  %3766 = vst [vmem:[%s5452_s19 + $0x48] sm:$0x1] %v3765_v37  ;;  %v3778_v22 = vsel %vm6597_vm12, 0, %v3777_v63  ;;  %v3781_v59 = vsel %vm6597_vm12, 0, %v3780_v28 }
 0x3fc   : > { %3773 = vst [vmem:[%s5452_s19 + $0x8] sm:$0x1] %v3772_v61  ;;  %3735 = vst [vmem:[%s5452_s19 + $0x4c] sm:$0xf] %v3642_v41  ;;  %v3784_v30 = vsel %vm6597_vm12, 0, %v3783_v11  ;;  %v3787_v0 = vsel %vm6597_vm12, 0, %v3786_v60 }
 0x3fd   : > { %3742 = vst [vmem:[%s5452_s19 + $0x58] sm:$0xf] %v3659_v39  ;;  %3776 = vst [vmem:[%s5452_s19 + $0x14] sm:$0x1] %v3775_v5  ;;  %v3767_v38 = vld [vmem:[%s5452_s19 + $0x54] sm:$0x1] }
 0x3fe   : > { %3779 = vst [vmem:[%s5452_s19 + $0x20] sm:$0x1] %v3778_v22  ;;  %3782 = vst [vmem:[%s5452_s19 + $0x2c] sm:$0x1] %v3781_v59  ;;  %v3789_v13 = vld [vmem:[%s5452_s19 + $0x50] sm:$0x1] }
 0x3ff   : > { %3785 = vst [vmem:[%s5452_s19 + $0x38] sm:$0x1] %v3784_v30  ;;  %3788 = vst [vmem:[%s5452_s19 + $0x44] sm:$0x1] %v3787_v0  ;;  %v3768_v20 = vsel %vm6413_vm6, 0, %v3767_v38  ;;  %v3790_v51 = vsel %vm6597_vm12, 0, %v3789_v13 }
 0x400   : > { %3769 = vst [vmem:[%s5452_s19 + $0x54] sm:$0x1] %v3768_v20  ;;  %3791 = vst [vmem:[%s5452_s19 + $0x50] sm:$0x1] %v3790_v51  ;;  %v3792_v4 = vld [vmem:[%s5452_s19 + $0x5c] sm:$0x1] }
 0x401   : > { %v3793_v49 = vsel %vm6597_vm12, 0, %v3792_v4 }
 0x402   : > { %3794 = vst [vmem:[%s5452_s19 + $0x5c] sm:$0x1] %v3793_v49 }
 0x403 PF: > { %s16_s25 = sadd.s32 1, %s5334_s25   ;;  %s6714_s21 = smov %s5326_s23 }
 0x404   : > { %p13_p12 = scmp.ge.s32.totalorder %s16_s25, 6   ;;  %s6715_s22 = smov %s5330_s24 }
 0x405   : > { %s6716_s23 = smov %s6719_s26  ;;  %s6717_s24 = smov %s6723_s27 }
 0x406   :  { %15 = sbr.rel (!%p13_p12) target bundleno = 3 (0x3), region = 96 }

</bundles_post_ra>
